<compile_context>
chip_gen: v7x
topology: tpu7x:2x2x1
jax: 0.10.0
libtpu: 0.0.40
codegen_flags: <defaults>
</compile_context>

<pallas_src>
import functools

import jax
import jax.numpy as jnp
from jax import lax
from jax.experimental import pallas as pl
from jax.experimental.pallas import tpu as pltpu


# ------------------------------ fused kernel -------------------------------- #

def _encoder_kernel(p_ref, w1_ref, b1_ref, w2_ref, b2_ref, w3_ref, b3_ref,
                    w4_ref, b4_ref, wl_ref, bl_ref, o_ref, o1s_ref, *,
                    M, C2, C1P, NK):
    """grid = (batch, lane_chunk).  conv1 per chunk; full tail at the last chunk."""
    f32 = jnp.float32
    bf16 = jnp.bfloat16
    k = pl.program_id(1)
    RPC = 12 // NK                                  # conv1 residues per lane chunk

    # ---- conv1 on this lane chunk: residues [RPC*k, RPC*(k+1)),  (C1P, RPC*M) ----
    o1c = jnp.dot(w1_ref[...], p_ref[0], preferred_element_type=f32)
    o1c = jnp.maximum(o1c + b1_ref[...], 0.0)

    # Scatter residue blocks into the residue-major scratch:
    # scratch rows [C1P*(1+r), C1P*(2+r)) hold residue r (channels on sublanes).
    for kk in range(NK):
        @pl.when(k == kk)
        def _(kk=kk):
            for rl in range(RPC):
                r = kk * RPC + rl
                o1s_ref[C1P * (1 + r):C1P * (2 + r), :] = o1c[:, rl * M:(rl + 1) * M]

    # ------------------------------- tail --------------------------------------
    @pl.when(k == pl.num_programs(1) - 1)
    def _tail():
        # hoisted edge masks (built once, reused by every shifted stream)
        col = lax.broadcasted_iota(jnp.int32, (1, M), 1)
        first = col == 0
        last = col == M - 1

        def shift_right(v):      # v[:, m] <- v[:, m-1]; zero at m=0  (left padding)
            return jnp.where(first, 0.0, pltpu.roll(v, shift=1, axis=1))

        def shift_left(v):       # v[:, m] <- v[:, m+1]; zero at m=M-1 (right padding)
            return jnp.where(last, 0.0, pltpu.roll(v, shift=M - 1, axis=1))

        # boundary streams: "residue -1" = shift_right(res 11), "residue 12" = shift_left(res 0)
        o1s_ref[0:C1P, :] = shift_right(o1s_ref[C1P * 12:C1P * 13, :])
        o1s_ref[C1P * 13:C1P * 14, :] = shift_left(o1s_ref[C1P * 1:C1P * 2, :])

        # conv2: K = (tap, channel) = 40; 4 output phases lane-concatenated -> one matmul.
        # Phase r2 needs residues 3*r2-1 .. 3*r2+3 == contiguous scratch rows [24*r2, 24*r2+40).
        rhs2 = jnp.concatenate(
            [o1s_ref[3 * C1P * r2:3 * C1P * r2 + 5 * C1P, :] for r2 in range(4)],
            axis=1).astype(bf16)                                           # (40, 4M)
        o2 = jnp.dot(w2_ref[...], rhs2, preferred_element_type=f32)
        o2 = jnp.maximum(o2 + b2_ref[...], 0.0)                            # (C2, 4M)

        # conv3: K = (tap, channel) = 24; 2 output phases lane-concatenated -> one matmul.
        s2m1 = shift_right(o2[:, 3 * M:4 * M])
        rhs3 = jnp.concatenate(
            [jnp.concatenate([s2m1, o2[:, 0:M], o2[:, M:2 * M]], axis=0),
             jnp.concatenate([o2[:, M:2 * M], o2[:, 2 * M:3 * M], o2[:, 3 * M:4 * M]],
                             axis=0)],
            axis=1).astype(bf16)                                           # (24, 2M)
        o3 = jnp.dot(w3_ref[...], rhs3, preferred_element_type=f32)
        o3 = jnp.maximum(o3 + b3_ref[...], 0.0)                            # (C2, 2M)

        # conv4: single phase, natural (c, w) output order -> one matmul.
        rhs4 = jnp.concatenate(
            [shift_right(o3[:, M:2 * M]), o3[:, 0:M], o3[:, M:2 * M]],
            axis=0).astype(bf16)                                           # (24, M)
        o4 = jnp.dot(w4_ref[...], rhs4, preferred_element_type=f32)
        o4 = jnp.maximum(o4 + b4_ref[...], 0.0)                            # (C2, M)

        # Linear on the NCHW flatten: single (1, C2*M) x (C2*M, latent) matmul.
        o4f = jnp.concatenate([o4[c:c + 1, :] for c in range(C2)],
                              axis=1).astype(bf16)                         # (1, C2*M)
        z = jnp.dot(o4f, wl_ref[...], preferred_element_type=f32) + bl_ref[...]
        o_ref[0] = jnp.maximum(z, 0.0)         # final act_fn() after the Linear (per spec)


# ------------------------------ forward glue -------------------------------- #

def encoder_forward(params, x):
    B, Cin, H, W = x.shape
    assert H == 2, "layout derivation assumes H == 2 (single conv1 H-window)"
    C1 = params["w1"].shape[0]                         # base_channel_size
    C2 = params["w2"].shape[0]                         # 2 * base_channel_size
    latent, feat = params["wl"].shape
    KW1 = params["w1"].shape[3]                        # 29
    assert W % KW1 == 0, "conv1 windows must be non-overlapping (reshape-able)"
    Wo1 = (W + 2 - KW1) // KW1 + 1                     # 3072
    assert Wo1 % 12 == 0
    M = Wo1 // 12                                      # 256 (final spatial size)
    assert feat == C2 * M and C2 == 8 and C1 <= 8
    K1 = Cin * 2 * KW1                                 # 174 (all-zero kh=0 plane dropped)
    C1P = 8                                            # pad conv1 out-channels to one f32 tile
    NK = 2                                             # inner lane-chunk axis (DMA overlap)

    # conv1 im2col (kept as a single XLA pass, done in bf16 to halve the transpose bytes):
    # left-pad one zero column, drop the unused last real column, reshape W into
    # (m, r, kw) and reorder to K-major, (r, m)-column order.
    xs = x[:, :, :, :KW1 * Wo1 - 1].astype(jnp.bfloat16)
    xs = jnp.pad(xs, ((0, 0), (0, 0), (0, 0), (1, 0)))
    patches = xs.reshape(B, Cin, 2, M, 12, KW1)
    patches = patches.transpose(0, 1, 2, 5, 4, 3).reshape(B, K1, 12 * M)

    # Weight preparation (tiny; only the kh=1 plane of conv2-4 is ever multiplied by data).
    w1e = params["w1"][:, :, 1:, :].reshape(C1, K1)
    w1e = jnp.pad(w1e, ((0, C1P - C1), (0, 0))).astype(jnp.bfloat16)       # (8, 174)
    b1c = jnp.pad(params["b1"], (0, C1P - C1)).reshape(C1P, 1)
    w2c = jnp.transpose(params["w2"][:, :, 1, :], (0, 2, 1))               # (C2, 5, C1)
    w2c = jnp.pad(w2c, ((0, 0), (0, 0), (0, C1P - C1)))
    w2c = w2c.reshape(C2, 5 * C1P).astype(jnp.bfloat16)                    # (8, 40)
    b2c = params["b2"].reshape(C2, 1)
    w3c = jnp.transpose(params["w3"][:, :, 1, :], (0, 2, 1)).reshape(C2, 3 * C2)
    w3c = w3c.astype(jnp.bfloat16)                                         # (8, 24)
    b3c = params["b3"].reshape(C2, 1)
    w4c = jnp.transpose(params["w4"][:, :, 1, :], (0, 2, 1)).reshape(C2, 3 * C2)
    w4c = w4c.astype(jnp.bfloat16)                                         # (8, 24)
    b4c = params["b4"].reshape(C2, 1)
    wlf = params["wl"].T.astype(jnp.bfloat16)                              # (C2*M, latent)
    blc = params["bl"].reshape(1, latent)

    kernel = functools.partial(_encoder_kernel, M=M, C2=C2, C1P=C1P, NK=NK)
    out = pl.pallas_call(
        kernel,
        out_shape=jax.ShapeDtypeStruct((B, 1, latent), jnp.float32),
        grid=(B, NK),
        in_specs=[
            pl.BlockSpec((1, K1, (12 // NK) * M), lambda b, k: (b, 0, k)),  # conv1 patches
            pl.BlockSpec((C1P, K1), lambda b, k: (0, 0)),                   # w1
            pl.BlockSpec((C1P, 1), lambda b, k: (0, 0)),                    # b1
            pl.BlockSpec((C2, 5 * C1P), lambda b, k: (0, 0)),               # w2 (tap-fused)
            pl.BlockSpec((C2, 1), lambda b, k: (0, 0)),                     # b2
            pl.BlockSpec((C2, 3 * C2), lambda b, k: (0, 0)),                # w3 (tap-fused)
            pl.BlockSpec((C2, 1), lambda b, k: (0, 0)),                     # b3
            pl.BlockSpec((C2, 3 * C2), lambda b, k: (0, 0)),                # w4 (tap-fused)
            pl.BlockSpec((C2, 1), lambda b, k: (0, 0)),                     # b4
            pl.BlockSpec((C2 * M, latent), lambda b, k: (0, 0)),            # linear weight
            pl.BlockSpec((1, latent), lambda b, k: (0, 0)),                 # linear bias
        ],
        out_specs=pl.BlockSpec((1, 1, latent), lambda b, k: (b, 0, 0)),
        scratch_shapes=[pltpu.VMEM((14 * C1P, M), jnp.float32)],            # conv1 streams
        compiler_params=pltpu.CompilerParams(
            dimension_semantics=("parallel", "arbitrary")),
    )(patches, w1e, b1c, w2c, b2c, w3c, b3c, w4c, b4c, wlf, blc)
    return out[:, 0, :]


# ------------------------------ reference (JAX) ------------------------------ #

def reference_forward(params, x):
    def conv(x, w, b, stride):
        y = lax.conv_general_dilated(
            x, w, window_strides=stride, padding=((1, 1), (1, 1)),
            dimension_numbers=("NCHW", "OIHW", "NCHW"),
            precision=lax.Precision.HIGHEST)
        return jnp.maximum(y + b[None, :, None, None], 0.0)

    y = conv(x, params["w1"], params["b1"], (2, 29))
    y = conv(y, params["w2"], params["b2"], (2, 3))
    y = conv(y, params["w3"], params["b3"], (2, 2))
    y = conv(y, params["w4"], params["b4"], (2, 2))
    flat = y.reshape(y.shape[0], -1)
    z = jnp.dot(flat, params["wl"].T, precision=lax.Precision.HIGHEST) + params["bl"]
    return jnp.maximum(z, 0.0)


# ------------------------------ parameter init ------------------------------ #

def init_params(key, num_input_channels, base_c, latent_dim):
    c, c2 = base_c, 2 * base_c
    keys = jax.random.split(key, 10)

    def conv_init(k, shape):                       # (Cout, Cin, KH, KW)
        fan_in = shape[1] * shape[2] * shape[3]
        return jax.random.normal(k, shape, jnp.float32) / jnp.sqrt(fan_in)

    def vec_init(k, n, fan_in):
        return jax.random.normal(k, (n,), jnp.float32) / jnp.sqrt(fan_in)

    return {
        "w1": conv_init(keys[0], (c, num_input_channels, 3, 29)),
        "b1": vec_init(keys[1], c, num_input_channels * 3 * 29),
        "w2": conv_init(keys[2], (c2, c, 3, 5)),
        "b2": vec_init(keys[3], c2, c * 3 * 5),
        "w3": conv_init(keys[4], (c2, c2, 3, 3)),
        "b3": vec_init(keys[5], c2, c2 * 9),
        "w4": conv_init(keys[6], (c2, c2, 3, 3)),
        "b4": vec_init(keys[7], c2, c2 * 9),
        # PyTorch Linear weight layout: (out_features, in_features)
        "wl": jax.random.normal(keys[8], (latent_dim, 512 * base_c), jnp.float32)
              / jnp.sqrt(512 * base_c),
        "bl": vec_init(keys[9], latent_dim, 512 * base_c),
    }


# ----------------------------------- main ----------------------------------- #

if __name__ == "__main__":
    B, C_in, H, W = 2, 3, 2, 89088     # smallest input consistent w/ 512*base_c flatten
    base_c, latent_dim = 4, 32

    key = jax.random.PRNGKey(0)
    kx, kp = jax.random.split(key)
    x = jax.random.normal(kx, (B, C_in, H, W), jnp.float32)
    params = init_params(kp, C_in, base_c, latent_dim)

    z = jax.block_until_ready(jax.jit(encoder_forward)(params, x))
    assert z.shape == (B, latent_dim), z.shape

    z_ref = jax.block_until_ready(jax.jit(reference_forward)(params, x))
    # bf16 MXU operands (f32 accumulation) vs an f32 HIGHEST reference -> ~1e-3-level diffs.
    if not bool(jnp.allclose(z, z_ref, atol=2e-2, rtol=2e-2)):
        err = float(jnp.max(jnp.abs(z - z_ref)))
        raise AssertionError(
            f"Pallas encoder output mismatches JAX reference (max abs err {err})")

    print("KERNEL_OK")
</pallas_src>

<mosaic_0001>
module attributes {stable_mosaic.version = 11 : i64} {
  func.func @_encoder_kernel(%arg0: i32, %arg1: i32, %arg2: memref<1x174x1536xbf16, #tpu.memory_space<vmem>>, %arg3: memref<8x174xbf16, #tpu.memory_space<vmem>>, %arg4: memref<8x1xf32, #tpu.memory_space<vmem>>, %arg5: memref<8x40xbf16, #tpu.memory_space<vmem>>, %arg6: memref<8x1xf32, #tpu.memory_space<vmem>>, %arg7: memref<8x24xbf16, #tpu.memory_space<vmem>>, %arg8: memref<8x1xf32, #tpu.memory_space<vmem>>, %arg9: memref<8x24xbf16, #tpu.memory_space<vmem>>, %arg10: memref<8x1xf32, #tpu.memory_space<vmem>>, %arg11: memref<2048x32xbf16, #tpu.memory_space<vmem>>, %arg12: memref<1x32xf32, #tpu.memory_space<vmem>>, %arg13: memref<1x1x32xf32, #tpu.memory_space<vmem>>, %arg14: memref<112x256xf32, #tpu.memory_space<vmem>>) attributes {dimension_semantics = [#tpu.dimension_semantics<parallel>, #tpu.dimension_semantics<arbitrary>], iteration_bounds = array<i64: 2, 2>, scalar_prefetch = 0 : i64, scratch_operands = 1 : i64, tpu.core_type = #tpu.core_type<tc>, window_params = [{transform_indices = @transform_0, window_bounds = array<i64: 1, 174, 1536>}, {pipeline_mode = #tpu.pipeline_mode<synchronous>, transform_indices = @transform_1, window_bounds = array<i64: 8, 174>}, {pipeline_mode = #tpu.pipeline_mode<synchronous>, transform_indices = @transform_2, window_bounds = array<i64: 8, 1>}, {pipeline_mode = #tpu.pipeline_mode<synchronous>, transform_indices = @transform_3, window_bounds = array<i64: 8, 40>}, {pipeline_mode = #tpu.pipeline_mode<synchronous>, transform_indices = @transform_4, window_bounds = array<i64: 8, 1>}, {pipeline_mode = #tpu.pipeline_mode<synchronous>, transform_indices = @transform_5, window_bounds = array<i64: 8, 24>}, {pipeline_mode = #tpu.pipeline_mode<synchronous>, transform_indices = @transform_6, window_bounds = array<i64: 8, 1>}, {pipeline_mode = #tpu.pipeline_mode<synchronous>, transform_indices = @transform_7, window_bounds = array<i64: 8, 24>}, {pipeline_mode = #tpu.pipeline_mode<synchronous>, transform_indices = @transform_8, window_bounds = array<i64: 8, 1>}, {pipeline_mode = #tpu.pipeline_mode<synchronous>, transform_indices = @transform_9, window_bounds = array<i64: 2048, 32>}, {pipeline_mode = #tpu.pipeline_mode<synchronous>, transform_indices = @transform_10, window_bounds = array<i64: 1, 32>}, {transform_indices = @transform_11, window_bounds = array<i64: 1, 1, 32>}]} {
    %c0 = arith.constant 0 : index
    %c0_0 = arith.constant 0 : index
    %0 = vector.load %arg3[%c0, %c0_0] : memref<8x174xbf16, #tpu.memory_space<vmem>>, vector<8x174xbf16>
    %c0_1 = arith.constant 0 : index
    %c0_2 = arith.constant 0 : index
    %c0_3 = arith.constant 0 : index
    %1 = vector.load %arg2[%c0_1, %c0_2, %c0_3] : memref<1x174x1536xbf16, #tpu.memory_space<vmem>>, vector<1x174x1536xbf16>
    %2 = vector.shape_cast %1 : vector<1x174x1536xbf16> to vector<174x1536xbf16>
    %cst = arith.constant dense<0.000000e+00> : vector<8x1536xf32>
    %3 = tpu.matmul %0, %2, %cst {dimension_numbers = #tpu.dot_dimension_numbers<[1], [0], [0], [1], [0, 0, 1, 1], [], []>} : vector<8x174xbf16>, vector<174x1536xbf16>, vector<8x1536xf32> -> vector<8x1536xf32>
    %c0_4 = arith.constant 0 : index
    %c0_5 = arith.constant 0 : index
    %4 = vector.load %arg4[%c0_4, %c0_5] : memref<8x1xf32, #tpu.memory_space<vmem>>, vector<8x1xf32>
    %5 = vector.broadcast %4 : vector<8x1xf32> to vector<8x1536xf32>
    %6 = arith.addf %3, %5 : vector<8x1536xf32>
    %cst_6 = arith.constant 0.000000e+00 : f32
    %7 = vector.broadcast %cst_6 : f32 to vector<8x1536xf32>
    %8 = arith.maximumf %6, %7 : vector<8x1536xf32>
    %c0_i32 = arith.constant 0 : i32
    %9 = arith.cmpi eq, %arg1, %c0_i32 : i32
    %10 = arith.extui %9 : i1 to i32
    %c0_i32_7 = arith.constant 0 : i32
    %11 = arith.cmpi ne, %10, %c0_i32_7 : i32
    scf.if %11 {
      %18 = vector.extract_strided_slice %8 {offsets = [0, 0], sizes = [8, 256], strides = [1, 1]} : vector<8x1536xf32> to vector<8x256xf32>
      %c8 = arith.constant 8 : index
      %c0_11 = arith.constant 0 : index
      %19 = vector.load %arg14[%c8, %c0_11] : memref<112x256xf32, #tpu.memory_space<vmem>>, vector<8x256xf32>
      tpu.vector_store %arg14[%c8, %c0_11], %18 {strides = array<i32>} : memref<112x256xf32, #tpu.memory_space<vmem>>, vector<8x256xf32>,
      %20 = vector.extract_strided_slice %8 {offsets = [0, 256], sizes = [8, 256], strides = [1, 1]} : vector<8x1536xf32> to vector<8x256xf32>
      %c16 = arith.constant 16 : index
      %c0_12 = arith.constant 0 : index
      %21 = vector.load %arg14[%c16, %c0_12] : memref<112x256xf32, #tpu.memory_space<vmem>>, vector<8x256xf32>
      tpu.vector_store %arg14[%c16, %c0_12], %20 {strides = array<i32>} : memref<112x256xf32, #tpu.memory_space<vmem>>, vector<8x256xf32>,
      %22 = vector.extract_strided_slice %8 {offsets = [0, 512], sizes = [8, 256], strides = [1, 1]} : vector<8x1536xf32> to vector<8x256xf32>
      %c24 = arith.constant 24 : index
      %c0_13 = arith.constant 0 : index
      %23 = vector.load %arg14[%c24, %c0_13] : memref<112x256xf32, #tpu.memory_space<vmem>>, vector<8x256xf32>
      tpu.vector_store %arg14[%c24, %c0_13], %22 {strides = array<i32>} : memref<112x256xf32, #tpu.memory_space<vmem>>, vector<8x256xf32>,
      %24 = vector.extract_strided_slice %8 {offsets = [0, 768], sizes = [8, 256], strides = [1, 1]} : vector<8x1536xf32> to vector<8x256xf32>
      %c32 = arith.constant 32 : index
      %c0_14 = arith.constant 0 : index
      %25 = vector.load %arg14[%c32, %c0_14] : memref<112x256xf32, #tpu.memory_space<vmem>>, vector<8x256xf32>
      tpu.vector_store %arg14[%c32, %c0_14], %24 {strides = array<i32>} : memref<112x256xf32, #tpu.memory_space<vmem>>, vector<8x256xf32>,
      %26 = vector.extract_strided_slice %8 {offsets = [0, 1024], sizes = [8, 256], strides = [1, 1]} : vector<8x1536xf32> to vector<8x256xf32>
      %c40 = arith.constant 40 : index
      %c0_15 = arith.constant 0 : index
      %27 = vector.load %arg14[%c40, %c0_15] : memref<112x256xf32, #tpu.memory_space<vmem>>, vector<8x256xf32>
      tpu.vector_store %arg14[%c40, %c0_15], %26 {strides = array<i32>} : memref<112x256xf32, #tpu.memory_space<vmem>>, vector<8x256xf32>,
      %28 = vector.extract_strided_slice %8 {offsets = [0, 1280], sizes = [8, 256], strides = [1, 1]} : vector<8x1536xf32> to vector<8x256xf32>
      %c48 = arith.constant 48 : index
      %c0_16 = arith.constant 0 : index
      %29 = vector.load %arg14[%c48, %c0_16] : memref<112x256xf32, #tpu.memory_space<vmem>>, vector<8x256xf32>
      tpu.vector_store %arg14[%c48, %c0_16], %28 {strides = array<i32>} : memref<112x256xf32, #tpu.memory_space<vmem>>, vector<8x256xf32>,
    } else {
    }
    %c1_i32 = arith.constant 1 : i32
    %12 = arith.cmpi eq, %arg1, %c1_i32 : i32
    %13 = arith.extui %12 : i1 to i32
    %c0_i32_8 = arith.constant 0 : i32
    %14 = arith.cmpi ne, %13, %c0_i32_8 : i32
    scf.if %14 {
      %18 = vector.extract_strided_slice %8 {offsets = [0, 0], sizes = [8, 256], strides = [1, 1]} : vector<8x1536xf32> to vector<8x256xf32>
      %c56 = arith.constant 56 : index
      %c0_11 = arith.constant 0 : index
      %19 = vector.load %arg14[%c56, %c0_11] : memref<112x256xf32, #tpu.memory_space<vmem>>, vector<8x256xf32>
      tpu.vector_store %arg14[%c56, %c0_11], %18 {strides = array<i32>} : memref<112x256xf32, #tpu.memory_space<vmem>>, vector<8x256xf32>,
      %20 = vector.extract_strided_slice %8 {offsets = [0, 256], sizes = [8, 256], strides = [1, 1]} : vector<8x1536xf32> to vector<8x256xf32>
      %c64 = arith.constant 64 : index
      %c0_12 = arith.constant 0 : index
      %21 = vector.load %arg14[%c64, %c0_12] : memref<112x256xf32, #tpu.memory_space<vmem>>, vector<8x256xf32>
      tpu.vector_store %arg14[%c64, %c0_12], %20 {strides = array<i32>} : memref<112x256xf32, #tpu.memory_space<vmem>>, vector<8x256xf32>,
      %22 = vector.extract_strided_slice %8 {offsets = [0, 512], sizes = [8, 256], strides = [1, 1]} : vector<8x1536xf32> to vector<8x256xf32>
      %c72 = arith.constant 72 : index
      %c0_13 = arith.constant 0 : index
      %23 = vector.load %arg14[%c72, %c0_13] : memref<112x256xf32, #tpu.memory_space<vmem>>, vector<8x256xf32>
      tpu.vector_store %arg14[%c72, %c0_13], %22 {strides = array<i32>} : memref<112x256xf32, #tpu.memory_space<vmem>>, vector<8x256xf32>,
      %24 = vector.extract_strided_slice %8 {offsets = [0, 768], sizes = [8, 256], strides = [1, 1]} : vector<8x1536xf32> to vector<8x256xf32>
      %c80 = arith.constant 80 : index
      %c0_14 = arith.constant 0 : index
      %25 = vector.load %arg14[%c80, %c0_14] : memref<112x256xf32, #tpu.memory_space<vmem>>, vector<8x256xf32>
      tpu.vector_store %arg14[%c80, %c0_14], %24 {strides = array<i32>} : memref<112x256xf32, #tpu.memory_space<vmem>>, vector<8x256xf32>,
      %26 = vector.extract_strided_slice %8 {offsets = [0, 1024], sizes = [8, 256], strides = [1, 1]} : vector<8x1536xf32> to vector<8x256xf32>
      %c88 = arith.constant 88 : index
      %c0_15 = arith.constant 0 : index
      %27 = vector.load %arg14[%c88, %c0_15] : memref<112x256xf32, #tpu.memory_space<vmem>>, vector<8x256xf32>
      tpu.vector_store %arg14[%c88, %c0_15], %26 {strides = array<i32>} : memref<112x256xf32, #tpu.memory_space<vmem>>, vector<8x256xf32>,
      %28 = vector.extract_strided_slice %8 {offsets = [0, 1280], sizes = [8, 256], strides = [1, 1]} : vector<8x1536xf32> to vector<8x256xf32>
      %c96 = arith.constant 96 : index
      %c0_16 = arith.constant 0 : index
      %29 = vector.load %arg14[%c96, %c0_16] : memref<112x256xf32, #tpu.memory_space<vmem>>, vector<8x256xf32>
      tpu.vector_store %arg14[%c96, %c0_16], %28 {strides = array<i32>} : memref<112x256xf32, #tpu.memory_space<vmem>>, vector<8x256xf32>,
    } else {
    }
    %c1_i32_9 = arith.constant 1 : i32
    %15 = arith.cmpi eq, %arg1, %c1_i32_9 : i32
    %16 = arith.extui %15 : i1 to i32
    %c0_i32_10 = arith.constant 0 : i32
    %17 = arith.cmpi ne, %16, %c0_i32_10 : i32
    scf.if %17 {
      %18 = tpu.iota {dimensions = array<i32: 1>} : vector<1x256xi32>
      %c0_i32_11 = arith.constant 0 : i32
      %19 = vector.broadcast %c0_i32_11 : i32 to vector<1x256xi32>
      %20 = arith.cmpi eq, %18, %19 : vector<1x256xi32>
      %c255_i32 = arith.constant 255 : i32
      %21 = vector.broadcast %c255_i32 : i32 to vector<1x256xi32>
      %22 = arith.cmpi eq, %18, %21 : vector<1x256xi32>
      %c96 = arith.constant 96 : index
      %c0_12 = arith.constant 0 : index
      %23 = vector.load %arg14[%c96, %c0_12] : memref<112x256xf32, #tpu.memory_space<vmem>>, vector<8x256xf32>
      %c1_i32_13 = arith.constant 1 : i32
      %24 = tpu.dynamic_rotate %23 by %c1_i32_13 dim 1 : vector<8x256xf32>, i32 -> vector<8x256xf32>
      %cst_14 = arith.constant 0.000000e+00 : f32
      %25 = vector.shape_cast %20 : vector<1x256xi1> to vector<1x256xi1>
      %26 = vector.broadcast %25 : vector<1x256xi1> to vector<8x256xi1>
      %27 = vector.broadcast %cst_14 : f32 to vector<8x256xf32>
      %28 = arith.select %26, %27, %24 : vector<8x256xi1>, vector<8x256xf32>
      %c0_15 = arith.constant 0 : index
      %c0_16 = arith.constant 0 : index
      %29 = vector.load %arg14[%c0_15, %c0_16] : memref<112x256xf32, #tpu.memory_space<vmem>>, vector<8x256xf32>
      tpu.vector_store %arg14[%c0_15, %c0_16], %28 {strides = array<i32>} : memref<112x256xf32, #tpu.memory_space<vmem>>, vector<8x256xf32>,
      %c8 = arith.constant 8 : index
      %c0_17 = arith.constant 0 : index
      %30 = vector.load %arg14[%c8, %c0_17] : memref<112x256xf32, #tpu.memory_space<vmem>>, vector<8x256xf32>
      %c255_i32_18 = arith.constant 255 : i32
      %31 = tpu.dynamic_rotate %30 by %c255_i32_18 dim 1 : vector<8x256xf32>, i32 -> vector<8x256xf32>
      %cst_19 = arith.constant 0.000000e+00 : f32
      %32 = vector.shape_cast %22 : vector<1x256xi1> to vector<1x256xi1>
      %33 = vector.broadcast %32 : vector<1x256xi1> to vector<8x256xi1>
      %34 = vector.broadcast %cst_19 : f32 to vector<8x256xf32>
      %35 = arith.select %33, %34, %31 : vector<8x256xi1>, vector<8x256xf32>
      %c104 = arith.constant 104 : index
      %c0_20 = arith.constant 0 : index
      %36 = vector.load %arg14[%c104, %c0_20] : memref<112x256xf32, #tpu.memory_space<vmem>>, vector<8x256xf32>
      tpu.vector_store %arg14[%c104, %c0_20], %35 {strides = array<i32>} : memref<112x256xf32, #tpu.memory_space<vmem>>, vector<8x256xf32>,
      %c0_21 = arith.constant 0 : index
      %c0_22 = arith.constant 0 : index
      %37 = vector.load %arg14[%c0_21, %c0_22] : memref<112x256xf32, #tpu.memory_space<vmem>>, vector<40x256xf32>
      %c24 = arith.constant 24 : index
      %c0_23 = arith.constant 0 : index
      %38 = vector.load %arg14[%c24, %c0_23] : memref<112x256xf32, #tpu.memory_space<vmem>>, vector<40x256xf32>
      %c48 = arith.constant 48 : index
      %c0_24 = arith.constant 0 : index
      %39 = vector.load %arg14[%c48, %c0_24] : memref<112x256xf32, #tpu.memory_space<vmem>>, vector<40x256xf32>
      %c72 = arith.constant 72 : index
      %c0_25 = arith.constant 0 : index
      %40 = vector.load %arg14[%c72, %c0_25] : memref<112x256xf32, #tpu.memory_space<vmem>>, vector<40x256xf32>
      %41 = tpu.concatenate %37, %38, %39, %40 in 1 : vector<40x256xf32>, vector<40x256xf32>, vector<40x256xf32>, vector<40x256xf32> -> vector<40x1024xf32>
      %42 = arith.truncf %41 : vector<40x1024xf32> to vector<40x1024xbf16>
      %c0_26 = arith.constant 0 : index
      %c0_27 = arith.constant 0 : index
      %43 = vector.load %arg5[%c0_26, %c0_27] : memref<8x40xbf16, #tpu.memory_space<vmem>>, vector<8x40xbf16>
      %cst_28 = arith.constant dense<0.000000e+00> : vector<8x1024xf32>
      %44 = tpu.matmul %43, %42, %cst_28 {dimension_numbers = #tpu.dot_dimension_numbers<[1], [0], [0], [1], [0, 0, 1, 1], [], []>} : vector<8x40xbf16>, vector<40x1024xbf16>, vector<8x1024xf32> -> vector<8x1024xf32>
      %c0_29 = arith.constant 0 : index
      %c0_30 = arith.constant 0 : index
      %45 = vector.load %arg6[%c0_29, %c0_30] : memref<8x1xf32, #tpu.memory_space<vmem>>, vector<8x1xf32>
      %46 = vector.broadcast %45 : vector<8x1xf32> to vector<8x1024xf32>
      %47 = arith.addf %44, %46 : vector<8x1024xf32>
      %cst_31 = arith.constant 0.000000e+00 : f32
      %48 = vector.broadcast %cst_31 : f32 to vector<8x1024xf32>
      %49 = arith.maximumf %47, %48 : vector<8x1024xf32>
      %50 = vector.extract_strided_slice %49 {offsets = [0, 768], sizes = [8, 256], strides = [1, 1]} : vector<8x1024xf32> to vector<8x256xf32>
      %c1_i32_32 = arith.constant 1 : i32
      %51 = tpu.dynamic_rotate %50 by %c1_i32_32 dim 1 : vector<8x256xf32>, i32 -> vector<8x256xf32>
      %cst_33 = arith.constant 0.000000e+00 : f32
      %52 = vector.shape_cast %20 : vector<1x256xi1> to vector<1x256xi1>
      %53 = vector.broadcast %52 : vector<1x256xi1> to vector<8x256xi1>
      %54 = vector.broadcast %cst_33 : f32 to vector<8x256xf32>
      %55 = arith.select %53, %54, %51 : vector<8x256xi1>, vector<8x256xf32>
      %56 = vector.extract_strided_slice %49 {offsets = [0, 0], sizes = [8, 256], strides = [1, 1]} : vector<8x1024xf32> to vector<8x256xf32>
      %57 = vector.extract_strided_slice %49 {offsets = [0, 256], sizes = [8, 256], strides = [1, 1]} : vector<8x1024xf32> to vector<8x256xf32>
      %58 = tpu.concatenate %55, %56, %57 in 0 : vector<8x256xf32>, vector<8x256xf32>, vector<8x256xf32> -> vector<24x256xf32>
      %59 = vector.extract_strided_slice %49 {offsets = [0, 256], sizes = [8, 256], strides = [1, 1]} : vector<8x1024xf32> to vector<8x256xf32>
      %60 = vector.extract_strided_slice %49 {offsets = [0, 512], sizes = [8, 256], strides = [1, 1]} : vector<8x1024xf32> to vector<8x256xf32>
      %61 = vector.extract_strided_slice %49 {offsets = [0, 768], sizes = [8, 256], strides = [1, 1]} : vector<8x1024xf32> to vector<8x256xf32>
      %62 = tpu.concatenate %59, %60, %61 in 0 : vector<8x256xf32>, vector<8x256xf32>, vector<8x256xf32> -> vector<24x256xf32>
      %63 = tpu.concatenate %58, %62 in 1 : vector<24x256xf32>, vector<24x256xf32> -> vector<24x512xf32>
      %64 = arith.truncf %63 : vector<24x512xf32> to vector<24x512xbf16>
      %c0_34 = arith.constant 0 : index
      %c0_35 = arith.constant 0 : index
      %65 = vector.load %arg7[%c0_34, %c0_35] : memref<8x24xbf16, #tpu.memory_space<vmem>>, vector<8x24xbf16>
      %cst_36 = arith.constant dense<0.000000e+00> : vector<8x512xf32>
      %66 = tpu.matmul %65, %64, %cst_36 {dimension_numbers = #tpu.dot_dimension_numbers<[1], [0], [0], [1], [0, 0, 1, 1], [], []>} : vector<8x24xbf16>, vector<24x512xbf16>, vector<8x512xf32> -> vector<8x512xf32>
      %c0_37 = arith.constant 0 : index
      %c0_38 = arith.constant 0 : index
      %67 = vector.load %arg8[%c0_37, %c0_38] : memref<8x1xf32, #tpu.memory_space<vmem>>, vector<8x1xf32>
      %68 = vector.broadcast %67 : vector<8x1xf32> to vector<8x512xf32>
      %69 = arith.addf %66, %68 : vector<8x512xf32>
      %cst_39 = arith.constant 0.000000e+00 : f32
      %70 = vector.broadcast %cst_39 : f32 to vector<8x512xf32>
      %71 = arith.maximumf %69, %70 : vector<8x512xf32>
      %72 = vector.extract_strided_slice %71 {offsets = [0, 256], sizes = [8, 256], strides = [1, 1]} : vector<8x512xf32> to vector<8x256xf32>
      %c1_i32_40 = arith.constant 1 : i32
      %73 = tpu.dynamic_rotate %72 by %c1_i32_40 dim 1 : vector<8x256xf32>, i32 -> vector<8x256xf32>
      %cst_41 = arith.constant 0.000000e+00 : f32
      %74 = vector.shape_cast %20 : vector<1x256xi1> to vector<1x256xi1>
      %75 = vector.broadcast %74 : vector<1x256xi1> to vector<8x256xi1>
      %76 = vector.broadcast %cst_41 : f32 to vector<8x256xf32>
      %77 = arith.select %75, %76, %73 : vector<8x256xi1>, vector<8x256xf32>
      %78 = vector.extract_strided_slice %71 {offsets = [0, 0], sizes = [8, 256], strides = [1, 1]} : vector<8x512xf32> to vector<8x256xf32>
      %79 = vector.extract_strided_slice %71 {offsets = [0, 256], sizes = [8, 256], strides = [1, 1]} : vector<8x512xf32> to vector<8x256xf32>
      %80 = tpu.concatenate %77, %78, %79 in 0 : vector<8x256xf32>, vector<8x256xf32>, vector<8x256xf32> -> vector<24x256xf32>
      %81 = arith.truncf %80 : vector<24x256xf32> to vector<24x256xbf16>
      %c0_42 = arith.constant 0 : index
      %c0_43 = arith.constant 0 : index
      %82 = vector.load %arg9[%c0_42, %c0_43] : memref<8x24xbf16, #tpu.memory_space<vmem>>, vector<8x24xbf16>
      %cst_44 = arith.constant dense<0.000000e+00> : vector<8x256xf32>
      %83 = tpu.matmul %82, %81, %cst_44 {dimension_numbers = #tpu.dot_dimension_numbers<[1], [0], [0], [1], [0, 0, 1, 1], [], []>} : vector<8x24xbf16>, vector<24x256xbf16>, vector<8x256xf32> -> vector<8x256xf32>
      %c0_45 = arith.constant 0 : index
      %c0_46 = arith.constant 0 : index
      %84 = vector.load %arg10[%c0_45, %c0_46] : memref<8x1xf32, #tpu.memory_space<vmem>>, vector<8x1xf32>
      %85 = vector.broadcast %84 : vector<8x1xf32> to vector<8x256xf32>
      %86 = arith.addf %83, %85 : vector<8x256xf32>
      %cst_47 = arith.constant 0.000000e+00 : f32
      %87 = vector.broadcast %cst_47 : f32 to vector<8x256xf32>
      %88 = arith.maximumf %86, %87 : vector<8x256xf32>
      %89 = vector.extract_strided_slice %88 {offsets = [0, 0], sizes = [1, 256], strides = [1, 1]} : vector<8x256xf32> to vector<1x256xf32>
      %90 = vector.extract_strided_slice %88 {offsets = [1, 0], sizes = [1, 256], strides = [1, 1]} : vector<8x256xf32> to vector<1x256xf32>
      %91 = vector.extract_strided_slice %88 {offsets = [2, 0], sizes = [1, 256], strides = [1, 1]} : vector<8x256xf32> to vector<1x256xf32>
      %92 = vector.extract_strided_slice %88 {offsets = [3, 0], sizes = [1, 256], strides = [1, 1]} : vector<8x256xf32> to vector<1x256xf32>
      %93 = vector.extract_strided_slice %88 {offsets = [4, 0], sizes = [1, 256], strides = [1, 1]} : vector<8x256xf32> to vector<1x256xf32>
      %94 = vector.extract_strided_slice %88 {offsets = [5, 0], sizes = [1, 256], strides = [1, 1]} : vector<8x256xf32> to vector<1x256xf32>
      %95 = vector.extract_strided_slice %88 {offsets = [6, 0], sizes = [1, 256], strides = [1, 1]} : vector<8x256xf32> to vector<1x256xf32>
      %96 = vector.extract_strided_slice %88 {offsets = [7, 0], sizes = [1, 256], strides = [1, 1]} : vector<8x256xf32> to vector<1x256xf32>
      %97 = tpu.concatenate %89, %90, %91, %92, %93, %94, %95, %96 in 1 : vector<1x256xf32>, vector<1x256xf32>, vector<1x256xf32>, vector<1x256xf32>, vector<1x256xf32>, vector<1x256xf32>, vector<1x256xf32>, vector<1x256xf32> -> vector<1x2048xf32>
      %98 = arith.truncf %97 : vector<1x2048xf32> to vector<1x2048xbf16>
      %c0_48 = arith.constant 0 : index
      %c0_49 = arith.constant 0 : index
      %99 = vector.load %arg11[%c0_48, %c0_49] : memref<2048x32xbf16, #tpu.memory_space<vmem>>, vector<2048x32xbf16>
      %cst_50 = arith.constant dense<0.000000e+00> : vector<1x32xf32>
      %100 = tpu.matmul %98, %99, %cst_50 {dimension_numbers = #tpu.dot_dimension_numbers<[1], [0], [0], [1], [0, 0, 1, 1], [], []>} : vector<1x2048xbf16>, vector<2048x32xbf16>, vector<1x32xf32> -> vector<1x32xf32>
      %c0_51 = arith.constant 0 : index
      %c0_52 = arith.constant 0 : index
      %101 = vector.load %arg12[%c0_51, %c0_52] : memref<1x32xf32, #tpu.memory_space<vmem>>, vector<1x32xf32>
      %102 = arith.addf %100, %101 : vector<1x32xf32>
      %cst_53 = arith.constant 0.000000e+00 : f32
      %103 = vector.broadcast %cst_53 : f32 to vector<1x32xf32>
      %104 = arith.maximumf %102, %103 : vector<1x32xf32>
      %c0_54 = arith.constant 0 : index
      %c0_55 = arith.constant 0 : index
      %c0_56 = arith.constant 0 : index
      %105 = vector.load %arg13[%c0_54, %c0_55, %c0_56] : memref<1x1x32xf32, #tpu.memory_space<vmem>>, vector<1x1x32xf32>
      %106 = vector.shape_cast %105 : vector<1x1x32xf32> to vector<1x32xf32>
      %107 = vector.shape_cast %104 : vector<1x32xf32> to vector<1x1x32xf32>
      tpu.vector_store %arg13[%c0_54, %c0_55, %c0_56], %107 {strides = array<i32>} : memref<1x1x32xf32, #tpu.memory_space<vmem>>, vector<1x1x32xf32>,
    } else {
    }
    return
  }
  func.func @transform_0(%arg0: i32, %arg1: i32) -> (i32, i32, i32) {
    %c0_i32 = arith.constant 0 : i32
    %c0_i32_0 = arith.constant 0 : i32
    return %arg0, %c0_i32, %arg1 : i32, i32, i32
  }
  func.func @transform_1(%arg0: i32, %arg1: i32) -> (i32, i32) {
    %c0_i32 = arith.constant 0 : i32
    %c0_i32_0 = arith.constant 0 : i32
    %c0_i32_1 = arith.constant 0 : i32
    return %c0_i32, %c0_i32_0 : i32, i32
  }
  func.func @transform_2(%arg0: i32, %arg1: i32) -> (i32, i32) {
    %c0_i32 = arith.constant 0 : i32
    %c0_i32_0 = arith.constant 0 : i32
    %c0_i32_1 = arith.constant 0 : i32
    return %c0_i32, %c0_i32_0 : i32, i32
  }
  func.func @transform_3(%arg0: i32, %arg1: i32) -> (i32, i32) {
    %c0_i32 = arith.constant 0 : i32
    %c0_i32_0 = arith.constant 0 : i32
    %c0_i32_1 = arith.constant 0 : i32
    return %c0_i32, %c0_i32_0 : i32, i32
  }
  func.func @transform_4(%arg0: i32, %arg1: i32) -> (i32, i32) {
    %c0_i32 = arith.constant 0 : i32
    %c0_i32_0 = arith.constant 0 : i32
    %c0_i32_1 = arith.constant 0 : i32
    return %c0_i32, %c0_i32_0 : i32, i32
  }
  func.func @transform_5(%arg0: i32, %arg1: i32) -> (i32, i32) {
    %c0_i32 = arith.constant 0 : i32
    %c0_i32_0 = arith.constant 0 : i32
    %c0_i32_1 = arith.constant 0 : i32
    return %c0_i32, %c0_i32_0 : i32, i32
  }
  func.func @transform_6(%arg0: i32, %arg1: i32) -> (i32, i32) {
    %c0_i32 = arith.constant 0 : i32
    %c0_i32_0 = arith.constant 0 : i32
    %c0_i32_1 = arith.constant 0 : i32
    return %c0_i32, %c0_i32_0 : i32, i32
  }
  func.func @transform_7(%arg0: i32, %arg1: i32) -> (i32, i32) {
    %c0_i32 = arith.constant 0 : i32
    %c0_i32_0 = arith.constant 0 : i32
    %c0_i32_1 = arith.constant 0 : i32
    return %c0_i32, %c0_i32_0 : i32, i32
  }
  func.func @transform_8(%arg0: i32, %arg1: i32) -> (i32, i32) {
    %c0_i32 = arith.constant 0 : i32
    %c0_i32_0 = arith.constant 0 : i32
    %c0_i32_1 = arith.constant 0 : i32
    return %c0_i32, %c0_i32_0 : i32, i32
  }
  func.func @transform_9(%arg0: i32, %arg1: i32) -> (i32, i32) {
    %c0_i32 = arith.constant 0 : i32
    %c0_i32_0 = arith.constant 0 : i32
    %c0_i32_1 = arith.constant 0 : i32
    return %c0_i32, %c0_i32_0 : i32, i32
  }
  func.func @transform_10(%arg0: i32, %arg1: i32) -> (i32, i32) {
    %c0_i32 = arith.constant 0 : i32
    %c0_i32_0 = arith.constant 0 : i32
    %c0_i32_1 = arith.constant 0 : i32
    return %c0_i32, %c0_i32_0 : i32, i32
  }
  func.func @transform_11(%arg0: i32, %arg1: i32) -> (i32, i32, i32) {
    %c0_i32 = arith.constant 0 : i32
    %c0_i32_0 = arith.constant 0 : i32
    %c0_i32_1 = arith.constant 0 : i32
    return %arg0, %c0_i32, %c0_i32_0 : i32, i32, i32
  }
}

</mosaic_0001>

<bundles_post_ra>
// kernel: encoder_forward.1
= control target key start
LH: loop header
LB: loop body
LE: loop exit
PB: predicated region body
PF: predicated region fallthrough
CT: control target
= control target key end

     0   :  { %s6104_s0 = inlined_call_operand.vmem [shape: bf16[2,174,3072], index: 0, kind: input, shape index: {}]   ;;  %s6105_s1 = inlined_call_operand.vmem [shape: bf16[8,174], index: 1, kind: input, shape index: {}]   ;;  %s6106_s2 = inlined_call_operand.vmem [shape: f32[8,1], index: 2, kind: input, shape index: {}]   ;;  %s6107_s3 = inlined_call_operand.vmem [shape: bf16[8,40], index: 3, kind: input, shape index: {}]   ;;  %s6108_s4 = inlined_call_operand.vmem [shape: f32[8,1], index: 4, kind: input, shape index: {}]   ;;  %s6109_s5 = inlined_call_operand.vmem [shape: bf16[8,24], index: 5, kind: input, shape index: {}]   ;;  %s6110_s6 = inlined_call_operand.vmem [shape: f32[8,1], index: 6, kind: input, shape index: {}]   ;;  %s6111_s7 = inlined_call_operand.vmem [shape: bf16[8,24], index: 7, kind: input, shape index: {}]   ;;  %s6112_s8 = inlined_call_operand.vmem [shape: f32[8,1], index: 8, kind: input, shape index: {}]   ;;  %s6113_s9 = inlined_call_operand.vmem [shape: bf16[2048,32], index: 9, kind: input, shape index: {}]   ;;  %s6114_s10 = inlined_call_operand.vmem [shape: f32[1,32], index: 10, kind: input, shape index: {}]   ;;  %s6115_s11 = inlined_call_operand.hbm [shape: f32[2,1,32], index: 11, kind: output, shape index: {}]  }
   0x1   :  { %6121 = sst [smem:[#allocation12_spill]] %s6104_s0 }
   0x2   :  { %6122 = sst [smem:[#allocation13_spill]] %s6105_s1 }
   0x3   :  { %6123 = sst [smem:[#allocation14_spill]] %s6106_s2 }
   0x4   :  { %6124 = sst [smem:[#allocation15_spill]] %s6114_s10 }
   0x5   :  { %6125 = sst [smem:[#allocation16_spill]] %s6115_s11 }
   0x6   :  { %16 = vsyncpa [#allocation5], 0 }
   0x7   :  { %18 = vsyncpa [#allocation5 + $0x1], 0  ;;  %s4892_s17 = smov 0   ;;  %s4894_s18 = smov 0  }
   0x8   :  { %s4896_s19 = smov 0   ;;  %s4898_s20 = smov 0  }
   0x9   :  { %s4900_s21 = smov 0   ;;  %s4902_s22 = smov 0  }
   0xa   :  { %s4904_s23 = smov 0   ;;  %s4906_s24 = smov 0  }
   0xb   :  { %s4908_s25 = smov 0   ;;  %s4910_s26 = smov 0  }
   0xc LB: > { %6126 = sst [smem:[#allocation7_spill]] %s4788_s17  ;;  %s3791_s27 = sadd.s32 4294967295, %s4824_s26   ;;  %s4824_s26 = sphi %s4910_s26, %s24_s26   ;;  %s4820_s25 = sphi %s4908_s25, %s6155_s25   ;;  %s4816_s24 = sphi %s4906_s24, %s6154_s24   ;;  %s4812_s23 = sphi %s4904_s23, %s6153_s23   ;;  %s4808_s22 = sphi %s4902_s22, %s6152_s22   ;;  %s4804_s21 = sphi %s4900_s21, %s6151_s21   ;;  %s4800_s20 = sphi %s4898_s20, %s6150_s20   ;;  %s4796_s19 = sphi %s4896_s19, %s6149_s19   ;;  %s4792_s18 = sphi %s4894_s18, %s6148_s18   ;;  %s4788_s17 = sphi %s4892_s17, %s6147_s17  }
   0xd   : > { %6127 = sst [smem:[#allocation8_spill]] %s4812_s23  ;;  %s3792_s28 = sadd.s32 4294967294, %s4824_s26  }
   0xe   : > { %s33_s29 = sadd.s32 1, %s4816_s24  ;;  %s36_s30 = sadd.s32 1, %s4820_s25 }
   0xf   : > { %p34_p0 = scmp.ge.s32.totalorder %s33_s29, 2  ;;  %s45_s12 = sadd.s32 1, %s4804_s21 }
  0x10   : > { %p52_p1 = scmp.ne.s32.totalorder %s4804_s21, %s4800_s20  ;;  %p53_p2 = scmp.eq.s32.totalorder %s4824_s26, 0 }
  0x11   : > { %s6157_s29 = smov (%p34_p0, %s33_s29), 0  ;;  %s6159_s30 = smov (!%p34_p0, %s36_s30), %s4820_s25 }
  0x12   : > { %6128 = sst [smem:[#allocation9_spill]] %s6157_s29  ;;  %s41_s13 = ssub.s32 %s4816_s24, %s6157_s29 }
  0x13   : > { %p4955_p3 = por %p53_p2, %p52_p1  ;;  %p38_p4 = scmp.ge.s32.totalorder %s6159_s30, 2 }
  0x14   : > { %s281_s15 = sadd.s32 1, %s4796_s19  ;;  %p291_p5 = scmp.ne.s32.totalorder %s4796_s19, %s4792_s18 }
  0x15   : > { %p292_p6 = scmp.eq.s32.totalorder %s3791_s27, 3  ;;  %s6161_s30 = smov (%p38_p4, %s6159_s30), 0 }
  0x16   : > { %6130 = sst [smem:[#allocation10_spill]] %s6161_s30  ;;  %p297_p8 = scmp.ne.s32.totalorder %s4792_s18, %s4788_s17 }
  0x17   : > { %p4964_p7 = por %p292_p6, %p291_p5  ;;  %s40_s11 = ssub.s32 %s4820_s25, %s6161_s30 }
  0x18   : > { %p298_p9 = scmp.eq.s32.totalorder %s3792_s28, 3  ;;  %s42_s29 = sor.u32 %s41_s13, %s40_s11 }
  0x19   : > { %p279_p10 = scmp.eq.s32.totalorder %s40_s11, 0  ;;  %p43_p11 = scmp.eq.s32.totalorder %s42_s29, 0 }
  0x1a   : > { %p4972_p12 = por %p298_p9, %p297_p8  ;;  %p3794_p13 = scmp.ge.s32.totalorder %s4824_s26, 4 }
  0x1b   : > { %s4977_s10 = scalar_select %p279_p10, %s4796_s19, %s281_s15  }
  0x1c   : > { %s6132_s23 = scalar_select %p4972_p12, 1, 0 }
  0x1d   : > { %s4980_s27 = scalar_select %p43_p11, %s4804_s21, %s45_s12  }
  0x1e   : > { %6133 = sst [smem:[#allocation11_spill]] %s6132_s23  ;;  %344 = sbr.rel (%p3794_p13) target bundleno = 112 (0x70), region = 56 }
  0x25   : > { %347 = sbr.rel (!%p4955_p3) target bundleno = 112 (0x70), region = 60  ;;  %s349_s28 = sand.u32 (%p4955_p3), 1, %s4804_s21  }
  0x26   : > { %s352_s11 = smul.u32 (%p4955_p3), 12, %s4816_s24  ;;  %s6134_s0 = sld [smem:[#allocation12_spill]] (%p4955_p3) }
  0x27   : > { %s4274_s29 = smul.u32 (%p4955_p3), 1056, %s349_s28 }
  0x28   : > { %s4275_s13 = smul.u32 (%p4955_p3), 528, %s4820_s25 }
  0x29   : > { %s4996_s14 = scalar_lea.vmem (%p4955_p3), [#allocation3], %s4274_s29 }
  0x2a   : > { %s354_s30 = sadd.s32 (%p4955_p3), %s4275_s13, %s352_s11 }
  0x2b   : > { %s3795_s17 = sshll.u32 (%p4955_p3), %s354_s30, 2 }
  0x2c   : > { %s4991_s12 = scalar_lea.vmem %s6134_s0, %s3795_s17 }
  0x2d   : > { %v369_v0 = vld [vmem:[%s4991_s12] sm:$0xff]  ;;  %v371_v1 = vld [vmem:[%s4991_s12 + $0x8] sm:$0xff]  ;;  %v373_v2 = vld [vmem:[%s4991_s12 + $0x10] sm:$0xff] }
  0x2e   : > { %370 = vst [vmem:[%s4996_s14] sm:$0xff] %v369_v0  ;;  %372 = vst [vmem:[%s4996_s14 + $0x8] sm:$0xff] %v371_v1  ;;  %v375_v3 = vld [vmem:[%s4991_s12 + $0x18] sm:$0xff]  ;;  %v377_v4 = vld [vmem:[%s4991_s12 + $0x20] sm:$0xff] }
  0x2f   : > { %374 = vst [vmem:[%s4996_s14 + $0x10] sm:$0xff] %v373_v2  ;;  %v379_v5 = vld [vmem:[%s4991_s12 + $0x28] sm:$0xff]  ;;  %376 = vst [vmem:[%s4996_s14 + $0x18] sm:$0xff] %v375_v3  ;;  %v381_v6 = vld [vmem:[%s4991_s12 + $0x60] sm:$0xff] }
  0x30   : > { %378 = vst [vmem:[%s4996_s14 + $0x20] sm:$0xff] %v377_v4  ;;  %380 = vst [vmem:[%s4996_s14 + $0x28] sm:$0xff] %v379_v5  ;;  %v383_v7 = vld [vmem:[%s4991_s12 + $0x68] sm:$0xff]  ;;  %v385_v8 = vld [vmem:[%s4991_s12 + $0x70] sm:$0xff] }
  0x31   : > { %382 = vst [vmem:[%s4996_s14 + $0x30] sm:$0xff] %v381_v6  ;;  %384 = vst [vmem:[%s4996_s14 + $0x38] sm:$0xff] %v383_v7  ;;  %v387_v9 = vld [vmem:[%s4991_s12 + $0x78] sm:$0xff]  ;;  %v389_v10 = vld [vmem:[%s4991_s12 + $0x80] sm:$0xff] }
  0x32   : > { %386 = vst [vmem:[%s4996_s14 + $0x40] sm:$0xff] %v385_v8  ;;  %v391_v11 = vld [vmem:[%s4991_s12 + $0x88] sm:$0xff]  ;;  %388 = vst [vmem:[%s4996_s14 + $0x48] sm:$0xff] %v387_v9  ;;  %v393_v12 = vld [vmem:[%s4991_s12 + $0xc0] sm:$0xff] }
  0x33   : > { %390 = vst [vmem:[%s4996_s14 + $0x50] sm:$0xff] %v389_v10  ;;  %392 = vst [vmem:[%s4996_s14 + $0x58] sm:$0xff] %v391_v11  ;;  %v395_v13 = vld [vmem:[%s4991_s12 + $0xc8] sm:$0xff]  ;;  %v397_v14 = vld [vmem:[%s4991_s12 + $0xd0] sm:$0xff] }
  0x34   : > { %394 = vst [vmem:[%s4996_s14 + $0x60] sm:$0xff] %v393_v12  ;;  %396 = vst [vmem:[%s4996_s14 + $0x68] sm:$0xff] %v395_v13  ;;  %v399_v15 = vld [vmem:[%s4991_s12 + $0xd8] sm:$0xff]  ;;  %v401_v16 = vld [vmem:[%s4991_s12 + $0xe0] sm:$0xff] }
  0x35   : > { %398 = vst [vmem:[%s4996_s14 + $0x70] sm:$0xff] %v397_v14  ;;  %v403_v17 = vld [vmem:[%s4991_s12 + $0xe8] sm:$0xff]  ;;  %400 = vst [vmem:[%s4996_s14 + $0x78] sm:$0xff] %v399_v15  ;;  %v405_v18 = vld [vmem:[%s4991_s12 + $0x120] sm:$0xff] }
  0x36   : > { %402 = vst [vmem:[%s4996_s14 + $0x80] sm:$0xff] %v401_v16  ;;  %404 = vst [vmem:[%s4996_s14 + $0x88] sm:$0xff] %v403_v17  ;;  %v407_v19 = vld [vmem:[%s4991_s12 + $0x128] sm:$0xff]  ;;  %v409_v20 = vld [vmem:[%s4991_s12 + $0x130] sm:$0xff] }
  0x37   : > { %406 = vst [vmem:[%s4996_s14 + $0x90] sm:$0xff] %v405_v18  ;;  %408 = vst [vmem:[%s4996_s14 + $0x98] sm:$0xff] %v407_v19  ;;  %v411_v21 = vld [vmem:[%s4991_s12 + $0x138] sm:$0xff]  ;;  %v413_v22 = vld [vmem:[%s4991_s12 + $0x140] sm:$0xff] }
  0x38   : > { %410 = vst [vmem:[%s4996_s14 + $0xa0] sm:$0xff] %v409_v20  ;;  %v415_v23 = vld [vmem:[%s4991_s12 + $0x148] sm:$0xff]  ;;  %412 = vst [vmem:[%s4996_s14 + $0xa8] sm:$0xff] %v411_v21  ;;  %v417_v24 = vld [vmem:[%s4991_s12 + $0x180] sm:$0xff] }
  0x39   : > { %414 = vst [vmem:[%s4996_s14 + $0xb0] sm:$0xff] %v413_v22  ;;  %416 = vst [vmem:[%s4996_s14 + $0xb8] sm:$0xff] %v415_v23  ;;  %v419_v25 = vld [vmem:[%s4991_s12 + $0x188] sm:$0xff]  ;;  %v421_v26 = vld [vmem:[%s4991_s12 + $0x190] sm:$0xff] }
  0x3a   : > { %418 = vst [vmem:[%s4996_s14 + $0xc0] sm:$0xff] %v417_v24  ;;  %420 = vst [vmem:[%s4996_s14 + $0xc8] sm:$0xff] %v419_v25  ;;  %v423_v27 = vld [vmem:[%s4991_s12 + $0x198] sm:$0xff]  ;;  %v425_v28 = vld [vmem:[%s4991_s12 + $0x1a0] sm:$0xff] }
  0x3b   : > { %422 = vst [vmem:[%s4996_s14 + $0xd0] sm:$0xff] %v421_v26  ;;  %v427_v29 = vld [vmem:[%s4991_s12 + $0x1a8] sm:$0xff]  ;;  %424 = vst [vmem:[%s4996_s14 + $0xd8] sm:$0xff] %v423_v27  ;;  %v429_v30 = vld [vmem:[%s4991_s12 + $0x1e0] sm:$0xff] }
  0x3c   : > { %426 = vst [vmem:[%s4996_s14 + $0xe0] sm:$0xff] %v425_v28  ;;  %428 = vst [vmem:[%s4996_s14 + $0xe8] sm:$0xff] %v427_v29  ;;  %v431_v31 = vld [vmem:[%s4991_s12 + $0x1e8] sm:$0xff]  ;;  %v433_v32 = vld [vmem:[%s4991_s12 + $0x1f0] sm:$0xff] }
  0x3d   : > { %430 = vst [vmem:[%s4996_s14 + $0xf0] sm:$0xff] %v429_v30  ;;  %432 = vst [vmem:[%s4996_s14 + $0xf8] sm:$0xff] %v431_v31  ;;  %v435_v33 = vld [vmem:[%s4991_s12 + $0x1f8] sm:$0xff]  ;;  %v437_v34 = vld [vmem:[%s4991_s12 + $0x200] sm:$0xff] }
  0x3e   : > { %434 = vst [vmem:[%s4996_s14 + $0x100] sm:$0xff] %v433_v32  ;;  %v439_v35 = vld [vmem:[%s4991_s12 + $0x208] sm:$0xff]  ;;  %436 = vst [vmem:[%s4996_s14 + $0x108] sm:$0xff] %v435_v33  ;;  %v441_v36 = vld [vmem:[%s4991_s12 + $0x240] sm:$0xff] }
  0x3f   : > { %438 = vst [vmem:[%s4996_s14 + $0x110] sm:$0xff] %v437_v34  ;;  %440 = vst [vmem:[%s4996_s14 + $0x118] sm:$0xff] %v439_v35  ;;  %v443_v37 = vld [vmem:[%s4991_s12 + $0x248] sm:$0xff]  ;;  %v445_v38 = vld [vmem:[%s4991_s12 + $0x250] sm:$0xff] }
  0x40   : > { %442 = vst [vmem:[%s4996_s14 + $0x120] sm:$0xff] %v441_v36  ;;  %444 = vst [vmem:[%s4996_s14 + $0x128] sm:$0xff] %v443_v37  ;;  %v447_v39 = vld [vmem:[%s4991_s12 + $0x258] sm:$0xff]  ;;  %v449_v40 = vld [vmem:[%s4991_s12 + $0x260] sm:$0xff] }
  0x41   : > { %446 = vst [vmem:[%s4996_s14 + $0x130] sm:$0xff] %v445_v38  ;;  %v451_v41 = vld [vmem:[%s4991_s12 + $0x268] sm:$0xff]  ;;  %448 = vst [vmem:[%s4996_s14 + $0x138] sm:$0xff] %v447_v39  ;;  %v453_v42 = vld [vmem:[%s4991_s12 + $0x2a0] sm:$0xff] }
  0x42   : > { %450 = vst [vmem:[%s4996_s14 + $0x140] sm:$0xff] %v449_v40  ;;  %452 = vst [vmem:[%s4996_s14 + $0x148] sm:$0xff] %v451_v41  ;;  %v455_v43 = vld [vmem:[%s4991_s12 + $0x2a8] sm:$0xff]  ;;  %v457_v44 = vld [vmem:[%s4991_s12 + $0x2b0] sm:$0xff] }
  0x43   : > { %454 = vst [vmem:[%s4996_s14 + $0x150] sm:$0xff] %v453_v42  ;;  %456 = vst [vmem:[%s4996_s14 + $0x158] sm:$0xff] %v455_v43  ;;  %v459_v45 = vld [vmem:[%s4991_s12 + $0x2b8] sm:$0xff]  ;;  %v461_v46 = vld [vmem:[%s4991_s12 + $0x2c0] sm:$0xff] }
  0x44   : > { %458 = vst [vmem:[%s4996_s14 + $0x160] sm:$0xff] %v457_v44  ;;  %v463_v47 = vld [vmem:[%s4991_s12 + $0x2c8] sm:$0xff]  ;;  %460 = vst [vmem:[%s4996_s14 + $0x168] sm:$0xff] %v459_v45  ;;  %v465_v48 = vld [vmem:[%s4991_s12 + $0x300] sm:$0xff] }
  0x45   : > { %462 = vst [vmem:[%s4996_s14 + $0x170] sm:$0xff] %v461_v46  ;;  %464 = vst [vmem:[%s4996_s14 + $0x178] sm:$0xff] %v463_v47  ;;  %v467_v49 = vld [vmem:[%s4991_s12 + $0x308] sm:$0xff]  ;;  %v469_v50 = vld [vmem:[%s4991_s12 + $0x310] sm:$0xff] }
  0x46   : > { %466 = vst [vmem:[%s4996_s14 + $0x180] sm:$0xff] %v465_v48  ;;  %468 = vst [vmem:[%s4996_s14 + $0x188] sm:$0xff] %v467_v49  ;;  %v471_v51 = vld [vmem:[%s4991_s12 + $0x318] sm:$0xff]  ;;  %v473_v52 = vld [vmem:[%s4991_s12 + $0x320] sm:$0xff] }
  0x47   : > { %470 = vst [vmem:[%s4996_s14 + $0x190] sm:$0xff] %v469_v50  ;;  %v475_v53 = vld [vmem:[%s4991_s12 + $0x328] sm:$0xff]  ;;  %472 = vst [vmem:[%s4996_s14 + $0x198] sm:$0xff] %v471_v51  ;;  %v477_v54 = vld [vmem:[%s4991_s12 + $0x360] sm:$0xff] }
  0x48   : > { %474 = vst [vmem:[%s4996_s14 + $0x1a0] sm:$0xff] %v473_v52  ;;  %476 = vst [vmem:[%s4996_s14 + $0x1a8] sm:$0xff] %v475_v53  ;;  %v479_v55 = vld [vmem:[%s4991_s12 + $0x368] sm:$0xff]  ;;  %v481_v56 = vld [vmem:[%s4991_s12 + $0x370] sm:$0xff] }
  0x49   : > { %478 = vst [vmem:[%s4996_s14 + $0x1b0] sm:$0xff] %v477_v54  ;;  %480 = vst [vmem:[%s4996_s14 + $0x1b8] sm:$0xff] %v479_v55  ;;  %v483_v57 = vld [vmem:[%s4991_s12 + $0x378] sm:$0xff]  ;;  %v485_v58 = vld [vmem:[%s4991_s12 + $0x380] sm:$0xff] }
  0x4a   : > { %482 = vst [vmem:[%s4996_s14 + $0x1c0] sm:$0xff] %v481_v56  ;;  %v487_v59 = vld [vmem:[%s4991_s12 + $0x388] sm:$0xff]  ;;  %484 = vst [vmem:[%s4996_s14 + $0x1c8] sm:$0xff] %v483_v57  ;;  %v489_v60 = vld [vmem:[%s4991_s12 + $0x3c0] sm:$0xff] }
  0x4b   : > { %486 = vst [vmem:[%s4996_s14 + $0x1d0] sm:$0xff] %v485_v58  ;;  %488 = vst [vmem:[%s4996_s14 + $0x1d8] sm:$0xff] %v487_v59  ;;  %v491_v61 = vld [vmem:[%s4991_s12 + $0x3c8] sm:$0xff]  ;;  %v493_v62 = vld [vmem:[%s4991_s12 + $0x3d0] sm:$0xff] }
  0x4c   : > { %490 = vst [vmem:[%s4996_s14 + $0x1e0] sm:$0xff] %v489_v60  ;;  %492 = vst [vmem:[%s4996_s14 + $0x1e8] sm:$0xff] %v491_v61  ;;  %v495_v63 = vld [vmem:[%s4991_s12 + $0x3d8] sm:$0xff]  ;;  %v497_v0 = vld [vmem:[%s4991_s12 + $0x3e0] sm:$0xff] }
  0x4d   : > { %494 = vst [vmem:[%s4996_s14 + $0x1f0] sm:$0xff] %v493_v62  ;;  %v499_v1 = vld [vmem:[%s4991_s12 + $0x3e8] sm:$0xff]  ;;  %496 = vst [vmem:[%s4996_s14 + $0x1f8] sm:$0xff] %v495_v63  ;;  %v501_v2 = vld [vmem:[%s4991_s12 + $0x420] sm:$0xff] }
  0x4e   : > { %498 = vst [vmem:[%s4996_s14 + $0x200] sm:$0xff] %v497_v0  ;;  %500 = vst [vmem:[%s4996_s14 + $0x208] sm:$0xff] %v499_v1  ;;  %v503_v3 = vld [vmem:[%s4991_s12 + $0x428] sm:$0xff]  ;;  %v505_v4 = vld [vmem:[%s4991_s12 + $0x430] sm:$0xff] }
  0x4f   : > { %502 = vst [vmem:[%s4996_s14 + $0x210] sm:$0xff] %v501_v2  ;;  %504 = vst [vmem:[%s4996_s14 + $0x218] sm:$0xff] %v503_v3  ;;  %v507_v5 = vld [vmem:[%s4991_s12 + $0x438] sm:$0xff]  ;;  %v509_v6 = vld [vmem:[%s4991_s12 + $0x440] sm:$0xff] }
  0x50   : > { %506 = vst [vmem:[%s4996_s14 + $0x220] sm:$0xff] %v505_v4  ;;  %v511_v7 = vld [vmem:[%s4991_s12 + $0x448] sm:$0xff]  ;;  %508 = vst [vmem:[%s4996_s14 + $0x228] sm:$0xff] %v507_v5  ;;  %v513_v8 = vld [vmem:[%s4991_s12 + $0x480] sm:$0xff] }
  0x51   : > { %510 = vst [vmem:[%s4996_s14 + $0x230] sm:$0xff] %v509_v6  ;;  %512 = vst [vmem:[%s4996_s14 + $0x238] sm:$0xff] %v511_v7  ;;  %v515_v9 = vld [vmem:[%s4991_s12 + $0x488] sm:$0xff]  ;;  %v517_v10 = vld [vmem:[%s4991_s12 + $0x490] sm:$0xff] }
  0x52   : > { %514 = vst [vmem:[%s4996_s14 + $0x240] sm:$0xff] %v513_v8  ;;  %516 = vst [vmem:[%s4996_s14 + $0x248] sm:$0xff] %v515_v9  ;;  %v519_v11 = vld [vmem:[%s4991_s12 + $0x498] sm:$0xff]  ;;  %v521_v12 = vld [vmem:[%s4991_s12 + $0x4a0] sm:$0xff] }
  0x53   : > { %518 = vst [vmem:[%s4996_s14 + $0x250] sm:$0xff] %v517_v10  ;;  %v523_v13 = vld [vmem:[%s4991_s12 + $0x4a8] sm:$0xff]  ;;  %520 = vst [vmem:[%s4996_s14 + $0x258] sm:$0xff] %v519_v11  ;;  %v525_v14 = vld [vmem:[%s4991_s12 + $0x4e0] sm:$0xff] }
  0x54   : > { %522 = vst [vmem:[%s4996_s14 + $0x260] sm:$0xff] %v521_v12  ;;  %524 = vst [vmem:[%s4996_s14 + $0x268] sm:$0xff] %v523_v13  ;;  %v527_v15 = vld [vmem:[%s4991_s12 + $0x4e8] sm:$0xff]  ;;  %v529_v16 = vld [vmem:[%s4991_s12 + $0x4f0] sm:$0xff] }
  0x55   : > { %526 = vst [vmem:[%s4996_s14 + $0x270] sm:$0xff] %v525_v14  ;;  %528 = vst [vmem:[%s4996_s14 + $0x278] sm:$0xff] %v527_v15  ;;  %v531_v17 = vld [vmem:[%s4991_s12 + $0x4f8] sm:$0xff]  ;;  %v533_v18 = vld [vmem:[%s4991_s12 + $0x500] sm:$0xff] }
  0x56   : > { %530 = vst [vmem:[%s4996_s14 + $0x280] sm:$0xff] %v529_v16  ;;  %v535_v19 = vld [vmem:[%s4991_s12 + $0x508] sm:$0xff]  ;;  %532 = vst [vmem:[%s4996_s14 + $0x288] sm:$0xff] %v531_v17  ;;  %v537_v20 = vld [vmem:[%s4991_s12 + $0x540] sm:$0xff] }
  0x57   : > { %534 = vst [vmem:[%s4996_s14 + $0x290] sm:$0xff] %v533_v18  ;;  %536 = vst [vmem:[%s4996_s14 + $0x298] sm:$0xff] %v535_v19  ;;  %v539_v21 = vld [vmem:[%s4991_s12 + $0x548] sm:$0xff]  ;;  %v541_v22 = vld [vmem:[%s4991_s12 + $0x550] sm:$0xff] }
  0x58   : > { %538 = vst [vmem:[%s4996_s14 + $0x2a0] sm:$0xff] %v537_v20  ;;  %540 = vst [vmem:[%s4996_s14 + $0x2a8] sm:$0xff] %v539_v21  ;;  %v543_v23 = vld [vmem:[%s4991_s12 + $0x558] sm:$0xff]  ;;  %v545_v24 = vld [vmem:[%s4991_s12 + $0x560] sm:$0xff] }
  0x59   : > { %542 = vst [vmem:[%s4996_s14 + $0x2b0] sm:$0xff] %v541_v22  ;;  %v547_v25 = vld [vmem:[%s4991_s12 + $0x568] sm:$0xff]  ;;  %544 = vst [vmem:[%s4996_s14 + $0x2b8] sm:$0xff] %v543_v23  ;;  %v549_v26 = vld [vmem:[%s4991_s12 + $0x5a0] sm:$0xff] }
  0x5a   : > { %546 = vst [vmem:[%s4996_s14 + $0x2c0] sm:$0xff] %v545_v24  ;;  %548 = vst [vmem:[%s4996_s14 + $0x2c8] sm:$0xff] %v547_v25  ;;  %v551_v27 = vld [vmem:[%s4991_s12 + $0x5a8] sm:$0xff]  ;;  %v553_v28 = vld [vmem:[%s4991_s12 + $0x5b0] sm:$0xff] }
  0x5b   : > { %550 = vst [vmem:[%s4996_s14 + $0x2d0] sm:$0xff] %v549_v26  ;;  %552 = vst [vmem:[%s4996_s14 + $0x2d8] sm:$0xff] %v551_v27  ;;  %v555_v29 = vld [vmem:[%s4991_s12 + $0x5b8] sm:$0xff]  ;;  %v557_v30 = vld [vmem:[%s4991_s12 + $0x5c0] sm:$0xff] }
  0x5c   : > { %554 = vst [vmem:[%s4996_s14 + $0x2e0] sm:$0xff] %v553_v28  ;;  %v559_v31 = vld [vmem:[%s4991_s12 + $0x5c8] sm:$0xff]  ;;  %556 = vst [vmem:[%s4996_s14 + $0x2e8] sm:$0xff] %v555_v29  ;;  %v561_v32 = vld [vmem:[%s4991_s12 + $0x600] sm:$0xff] }
  0x5d   : > { %558 = vst [vmem:[%s4996_s14 + $0x2f0] sm:$0xff] %v557_v30  ;;  %560 = vst [vmem:[%s4996_s14 + $0x2f8] sm:$0xff] %v559_v31  ;;  %v563_v33 = vld [vmem:[%s4991_s12 + $0x608] sm:$0xff]  ;;  %v565_v34 = vld [vmem:[%s4991_s12 + $0x610] sm:$0xff] }
  0x5e   : > { %562 = vst [vmem:[%s4996_s14 + $0x300] sm:$0xff] %v561_v32  ;;  %564 = vst [vmem:[%s4996_s14 + $0x308] sm:$0xff] %v563_v33  ;;  %v567_v35 = vld [vmem:[%s4991_s12 + $0x618] sm:$0xff]  ;;  %v569_v36 = vld [vmem:[%s4991_s12 + $0x620] sm:$0xff] }
  0x5f   : > { %566 = vst [vmem:[%s4996_s14 + $0x310] sm:$0xff] %v565_v34  ;;  %v571_v37 = vld [vmem:[%s4991_s12 + $0x628] sm:$0xff]  ;;  %568 = vst [vmem:[%s4996_s14 + $0x318] sm:$0xff] %v567_v35  ;;  %v573_v38 = vld [vmem:[%s4991_s12 + $0x660] sm:$0xff] }
  0x60   : > { %570 = vst [vmem:[%s4996_s14 + $0x320] sm:$0xff] %v569_v36  ;;  %572 = vst [vmem:[%s4996_s14 + $0x328] sm:$0xff] %v571_v37  ;;  %v575_v39 = vld [vmem:[%s4991_s12 + $0x668] sm:$0xff]  ;;  %v577_v40 = vld [vmem:[%s4991_s12 + $0x670] sm:$0xff] }
  0x61   : > { %574 = vst [vmem:[%s4996_s14 + $0x330] sm:$0xff] %v573_v38  ;;  %576 = vst [vmem:[%s4996_s14 + $0x338] sm:$0xff] %v575_v39  ;;  %v579_v41 = vld [vmem:[%s4991_s12 + $0x678] sm:$0xff]  ;;  %v581_v42 = vld [vmem:[%s4991_s12 + $0x680] sm:$0xff] }
  0x62   : > { %578 = vst [vmem:[%s4996_s14 + $0x340] sm:$0xff] %v577_v40  ;;  %v583_v43 = vld [vmem:[%s4991_s12 + $0x688] sm:$0xff]  ;;  %580 = vst [vmem:[%s4996_s14 + $0x348] sm:$0xff] %v579_v41  ;;  %v585_v44 = vld [vmem:[%s4991_s12 + $0x6c0] sm:$0xff] }
  0x63   : > { %582 = vst [vmem:[%s4996_s14 + $0x350] sm:$0xff] %v581_v42  ;;  %584 = vst [vmem:[%s4996_s14 + $0x358] sm:$0xff] %v583_v43  ;;  %v587_v45 = vld [vmem:[%s4991_s12 + $0x6c8] sm:$0xff]  ;;  %v589_v46 = vld [vmem:[%s4991_s12 + $0x6d0] sm:$0xff] }
  0x64   : > { %586 = vst [vmem:[%s4996_s14 + $0x360] sm:$0xff] %v585_v44  ;;  %588 = vst [vmem:[%s4996_s14 + $0x368] sm:$0xff] %v587_v45  ;;  %v591_v47 = vld [vmem:[%s4991_s12 + $0x6d8] sm:$0xff]  ;;  %v593_v48 = vld [vmem:[%s4991_s12 + $0x6e0] sm:$0xff] }
  0x65   : > { %590 = vst [vmem:[%s4996_s14 + $0x370] sm:$0xff] %v589_v46  ;;  %v595_v49 = vld [vmem:[%s4991_s12 + $0x6e8] sm:$0xff]  ;;  %592 = vst [vmem:[%s4996_s14 + $0x378] sm:$0xff] %v591_v47  ;;  %v597_v50 = vld [vmem:[%s4991_s12 + $0x720] sm:$0xff] }
  0x66   : > { %594 = vst [vmem:[%s4996_s14 + $0x380] sm:$0xff] %v593_v48  ;;  %596 = vst [vmem:[%s4996_s14 + $0x388] sm:$0xff] %v595_v49  ;;  %v599_v51 = vld [vmem:[%s4991_s12 + $0x728] sm:$0xff]  ;;  %v601_v52 = vld [vmem:[%s4991_s12 + $0x730] sm:$0xff] }
  0x67   : > { %598 = vst [vmem:[%s4996_s14 + $0x390] sm:$0xff] %v597_v50  ;;  %600 = vst [vmem:[%s4996_s14 + $0x398] sm:$0xff] %v599_v51  ;;  %v603_v53 = vld [vmem:[%s4991_s12 + $0x738] sm:$0xff]  ;;  %v605_v54 = vld [vmem:[%s4991_s12 + $0x740] sm:$0xff] }
  0x68   : > { %602 = vst [vmem:[%s4996_s14 + $0x3a0] sm:$0xff] %v601_v52  ;;  %v607_v55 = vld [vmem:[%s4991_s12 + $0x748] sm:$0xff]  ;;  %604 = vst [vmem:[%s4996_s14 + $0x3a8] sm:$0xff] %v603_v53  ;;  %v609_v56 = vld [vmem:[%s4991_s12 + $0x780] sm:$0xff] }
  0x69   : > { %606 = vst [vmem:[%s4996_s14 + $0x3b0] sm:$0xff] %v605_v54  ;;  %608 = vst [vmem:[%s4996_s14 + $0x3b8] sm:$0xff] %v607_v55  ;;  %v611_v57 = vld [vmem:[%s4991_s12 + $0x788] sm:$0xff]  ;;  %v613_v58 = vld [vmem:[%s4991_s12 + $0x790] sm:$0xff] }
  0x6a   : > { %610 = vst [vmem:[%s4996_s14 + $0x3c0] sm:$0xff] %v609_v56  ;;  %612 = vst [vmem:[%s4996_s14 + $0x3c8] sm:$0xff] %v611_v57  ;;  %v615_v59 = vld [vmem:[%s4991_s12 + $0x798] sm:$0xff]  ;;  %v617_v60 = vld [vmem:[%s4991_s12 + $0x7a0] sm:$0xff] }
  0x6b   : > { %614 = vst [vmem:[%s4996_s14 + $0x3d0] sm:$0xff] %v613_v58  ;;  %v619_v61 = vld [vmem:[%s4991_s12 + $0x7a8] sm:$0xff]  ;;  %616 = vst [vmem:[%s4996_s14 + $0x3d8] sm:$0xff] %v615_v59  ;;  %v621_v62 = vld [vmem:[%s4991_s12 + $0x7e0] sm:$0xff] }
  0x6c   : > { %618 = vst [vmem:[%s4996_s14 + $0x3e0] sm:$0xff] %v617_v60  ;;  %620 = vst [vmem:[%s4996_s14 + $0x3e8] sm:$0xff] %v619_v61  ;;  %v623_v63 = vld [vmem:[%s4991_s12 + $0x7e8] sm:$0xff]  ;;  %v625_v0 = vld [vmem:[%s4991_s12 + $0x7f0] sm:$0xff] }
  0x6d   : > { %622 = vst [vmem:[%s4996_s14 + $0x3f0] sm:$0xff] %v621_v62  ;;  %624 = vst [vmem:[%s4996_s14 + $0x3f8] sm:$0xff] %v623_v63  ;;  %v627_v1 = vld [vmem:[%s4991_s12 + $0x7f8] sm:$0xff]  ;;  %v629_v2 = vld [vmem:[%s4991_s12 + $0x800] sm:$0xff] }
  0x6e   : > { %626 = vst [vmem:[%s4996_s14 + $0x400] sm:$0xff] %v625_v0  ;;  %v631_v3 = vld [vmem:[%s4991_s12 + $0x808] sm:$0xff]  ;;  %628 = vst [vmem:[%s4996_s14 + $0x408] sm:$0xff] %v627_v1 }
  0x6f   : > { %630 = vst [vmem:[%s4996_s14 + $0x410] sm:$0xff] %v629_v2  ;;  %632 = vst [vmem:[%s4996_s14 + $0x418] sm:$0xff] %v631_v3 }
  0x70 PF: > { %p3796_p0 = scmp.ge.s32.totalorder %s4824_s26, 1  ;;  %p637_p1 = scmp.lt.s32.totalorder %s4824_s26, 5 }
  0x72   : > { %p638_p2 = pnand %p3796_p0, %p637_p1 }
  0x73   : > { %s644_s17 = sand.u32 (!%p638_p2), 1, %s4800_s20   ;;  %s680_s23 = sand.u32 (!%p638_p2), 1, %s4792_s18   ;;  %vm1477_vm0 = vcmask (!%p638_p2), 375808   ;;  %v4826_v8 = vmov (!%p638_p2), 0   ;;  %vm1481_vm1 = vcmask (!%p638_p2), 1046528  }
  0x74   : > { %641 = sbr.rel (%p638_p2) target bundleno = 1756 (0x6dc), region = 83  ;;  %s6135_s1 = sld [smem:[#allocation13_spill]] (!%p638_p2)  ;;  %4369 = vset.pattern.permute.xlu0 (!%p638_p2), %v4826_v8 }
  0x75   : > { %s4276_s11 = smul.u32 (!%p638_p2), 1056, %s644_s17  ;;  %s6136_s2 = sld [smem:[#allocation14_spill]] (!%p638_p2) }
  0x76   : > { %s5471_s15 = scalar_lea.vmem (!%p638_p2), [#allocation4], %s680_s23  ;;  %p3943_p3 = scmp.ne.s32.totalorder (!%p638_p2), %s4808_s22, 0 }
  0x77   : > { %s5276_s29 = scalar_lea.vmem (!%p638_p2), [#allocation3], %s4276_s11 }
  0x78   : > { %v4370_v6 = vld [vmem:[%s5276_s29 + $0x4] ss:$48 sps:$4 sm:$0xff] (!%p638_p2)   ;;  %v4372_v7 = vld [vmem:[%s5276_s29 + $0xc] ss:$48 sps:$4 sm:$0xff] (!%p638_p2)   ;;  %v4374_v9 = vld [vmem:[%s5276_s29] ss:$48 sps:$4 sm:$0xff] (!%p638_p2)  }
  0x79   : > { %1518 = vmatprep.subr.bf16.mxu0 (!%p638_p2), %v4370_v6  ;;  %v4375_v10 = vld [vmem:[%s5276_s29 + $0x8] ss:$48 sps:$4 sm:$0xff] (!%p638_p2)   ;;  %1559 = vmatprep.subr.bf16.mxu1 (!%p638_p2), %v4372_v7  ;;  %v4376_v11 = vld [vmem:[%s5276_s29 + $0x64] ss:$48 sps:$4 sm:$0xff] (!%p638_p2)   ;;  %v4378_v12 = vld [vmem:[%s5276_s29 + $0x6c] ss:$48 sps:$4 sm:$0xff] (!%p638_p2)  }
  0x7a   : > { %v5266_v4 = vld [vmem:[%s6135_s1] sm:$0xff] (!%p638_p2)  ;;  %1519 = vmatpush1.bf16.msra.mxu0 (!%p638_p2), %v4374_v9  ;;  %1560 = vmatpush1.bf16.msra.mxu1 (!%p638_p2), %v4375_v10  ;;  %v4381_v14 = vld [vmem:[%s5276_s29 + $0x68] ss:$48 sps:$4 sm:$0xff] (!%p638_p2)   ;;  %v4384_v16 = vld [vmem:[%s5276_s29 + $0xcc] ss:$48 sps:$4 sm:$0xff] (!%p638_p2)  }
  0x7b   : > { %v5270_v5 = vcombine.high %v5266_v4, %v5266_v4  ;;  %v4380_v13 = vld [vmem:[%s5276_s29 + $0x60] ss:$48 sps:$4 sm:$0xff]   ;;  %1520 = vmatprep.subr.bf16.mxu0 %v4376_v11  ;;  %1561 = vmatprep.subr.bf16.mxu1 %v4378_v12  ;;  %v4382_v15 = vld [vmem:[%s5276_s29 + $0xc4] ss:$48 sps:$4 sm:$0xff]   ;;  %v4387_v18 = vld [vmem:[%s5276_s29 + $0xc8] ss:$48 sps:$4 sm:$0xff]   ;;  %v5330_v55 = vcombine.low %v5266_v4, %v5266_v4 }
  0x7c   : > { %v4386_v17 = vld [vmem:[%s5276_s29 + $0xc0] ss:$48 sps:$4 sm:$0xff]   ;;  %v4388_v19 = vld [vmem:[%s5276_s29 + $0x124] ss:$48 sps:$4 sm:$0xff]   ;;  %v4390_v20 = vld [vmem:[%s5276_s29 + $0x12c] ss:$48 sps:$4 sm:$0xff]  }
  0x7d   : > { %3932 = vmatprep.mubr.msk.bf16.mxu0 %vm1477_vm0, %v5270_v5  ;;  %3934 = vmatprep.mubr.msk.bf16.mxu1 %vm1477_vm0, %v5270_v5  ;;  %v4392_v21 = vld [vmem:[%s5276_s29 + $0x120] ss:$48 sps:$4 sm:$0xff]   ;;  %v4393_v22 = vld [vmem:[%s5276_s29 + $0x128] ss:$48 sps:$4 sm:$0xff]   ;;  %v4394_v23 = vld [vmem:[%s5276_s29 + $0x184] ss:$48 sps:$4 sm:$0xff]  }
  0x7e   : > { %1521 = vmatpush1.bf16.msra.mxu0 %v4380_v13  ;;  %1562 = vmatpush1.bf16.msra.mxu1 %v4381_v14  ;;  %v4396_v24 = vld [vmem:[%s5276_s29 + $0x18c] ss:$48 sps:$4 sm:$0xff]   ;;  %v4398_v25 = vld [vmem:[%s5276_s29 + $0x180] ss:$48 sps:$4 sm:$0xff]   ;;  %v4399_v26 = vld [vmem:[%s5276_s29 + $0x188] ss:$48 sps:$4 sm:$0xff]  }
  0x7f   : > { %1522 = vmatprep.subr.bf16.mxu0 %v4382_v15  ;;  %1563 = vmatprep.subr.bf16.mxu1 %v4384_v16  ;;  %v4400_v27 = vld [vmem:[%s5276_s29 + $0x1e4] ss:$48 sps:$4 sm:$0xff]   ;;  %v4402_v28 = vld [vmem:[%s5276_s29 + $0x1ec] ss:$48 sps:$4 sm:$0xff]   ;;  %v4404_v29 = vld [vmem:[%s5276_s29 + $0x1e0] ss:$48 sps:$4 sm:$0xff]  }
  0x80   : > { %v4405_v30 = vld [vmem:[%s5276_s29 + $0x1e8] ss:$48 sps:$4 sm:$0xff]   ;;  %v4406_v31 = vld [vmem:[%s5276_s29 + $0x244] ss:$48 sps:$4 sm:$0xff]   ;;  %v4408_v32 = vld [vmem:[%s5276_s29 + $0x24c] ss:$48 sps:$4 sm:$0xff]  }
  0x81   : > { %v4410_v33 = vld [vmem:[%s5276_s29 + $0x240] ss:$48 sps:$4 sm:$0xff]   ;;  %v4411_v34 = vld [vmem:[%s5276_s29 + $0x248] ss:$48 sps:$4 sm:$0xff]   ;;  %v4412_v35 = vld [vmem:[%s5276_s29 + $0x2a4] ss:$48 sps:$4 sm:$0xff]  }
  0x82   : > { %1523 = vmatpush1.bf16.msra.mxu0 %v4386_v17  ;;  %1564 = vmatpush1.bf16.msra.mxu1 %v4387_v18  ;;  %v4414_v36 = vld [vmem:[%s5276_s29 + $0x2ac] ss:$48 sps:$4 sm:$0xff]   ;;  %v4416_v37 = vld [vmem:[%s5276_s29 + $0x2a0] ss:$48 sps:$4 sm:$0xff]   ;;  %v4417_v38 = vld [vmem:[%s5276_s29 + $0x2a8] ss:$48 sps:$4 sm:$0xff]  }
  0x83   : > { %1524 = vmatprep.subr.bf16.mxu0 %v4388_v19  ;;  %1565 = vmatprep.subr.bf16.mxu1 %v4390_v20  ;;  %v4418_v39 = vld [vmem:[%s5276_s29 + $0x304] ss:$48 sps:$4 sm:$0xff]   ;;  %v4420_v40 = vld [vmem:[%s5276_s29 + $0x30c] ss:$48 sps:$4 sm:$0xff]   ;;  %v4422_v41 = vld [vmem:[%s5276_s29 + $0x300] ss:$48 sps:$4 sm:$0xff]  }
  0x84   : > { %v4423_v42 = vld [vmem:[%s5276_s29 + $0x308] ss:$48 sps:$4 sm:$0xff]   ;;  %v4424_v43 = vld [vmem:[%s5276_s29 + $0x364] ss:$48 sps:$4 sm:$0xff]   ;;  %v4426_v44 = vld [vmem:[%s5276_s29 + $0x36c] ss:$48 sps:$4 sm:$0xff]  }
  0x85   : > { %v4428_v45 = vld [vmem:[%s5276_s29 + $0x360] ss:$48 sps:$4 sm:$0xff]   ;;  %v4429_v46 = vld [vmem:[%s5276_s29 + $0x368] ss:$48 sps:$4 sm:$0xff]   ;;  %v4440_v51 = vld [vmem:[%s5276_s29 + $0x14] ss:$48 sps:$4 sm:$0xff]  }
  0x86   : > { %1525 = vmatpush1.bf16.msra.mxu0 %v4392_v21  ;;  %1566 = vmatpush1.bf16.msra.mxu1 %v4393_v22  ;;  %v4430_v47 = vld [vmem:[%s5276_s29 + $0x3c4] ss:$48 sps:$4 sm:$0x7f]   ;;  %v4432_v48 = vld [vmem:[%s5276_s29 + $0x3cc] ss:$48 sps:$4 sm:$0x7f]  }
  0x87   : > { %1526 = vmatprep.subr.bf16.mxu0 %v4394_v23  ;;  %1567 = vmatprep.subr.bf16.mxu1 %v4396_v24  ;;  %v4434_v49 = vld [vmem:[%s5276_s29 + $0x3c0] ss:$48 sps:$4 sm:$0x7f]   ;;  %v4435_v50 = vld [vmem:[%s5276_s29 + $0x3c8] ss:$48 sps:$4 sm:$0x7f]  }
  0x88   : > { %v1483_v52 = vsel %vm1481_vm1, %v4434_v49, 0  ;;  %v1489_v53 = vsel %vm1481_vm1, %v4435_v50, 0  ;;  %v4443_v54 = vld [vmem:[%s5276_s29 + $0x1c] ss:$48 sps:$4 sm:$0xff]   ;;  %v4438_v56 = vld [vmem:[%s5276_s29 + $0x10] ss:$48 sps:$4 sm:$0xff]  }
  0x89   : > { %v4441_v57 = vld [vmem:[%s5276_s29 + $0x18] ss:$48 sps:$4 sm:$0xff]   ;;  %v4446_v58 = vld [vmem:[%s5276_s29 + $0x74] ss:$48 sps:$4 sm:$0xff]   ;;  %v4449_v59 = vld [vmem:[%s5276_s29 + $0x7c] ss:$48 sps:$4 sm:$0xff]  }
  0x8a   : > { %1527 = vmatpush1.bf16.msra.mxu0 %v4398_v25  ;;  %1568 = vmatpush1.bf16.msra.mxu1 %v4399_v26  ;;  %v4444_v60 = vld [vmem:[%s5276_s29 + $0x70] ss:$48 sps:$4 sm:$0xff]   ;;  %v4447_v61 = vld [vmem:[%s5276_s29 + $0x78] ss:$48 sps:$4 sm:$0xff]   ;;  %v4452_v62 = vld [vmem:[%s5276_s29 + $0xd4] ss:$48 sps:$4 sm:$0xff]  }
  0x8b   : > { %1528 = vmatprep.subr.bf16.mxu0 %v4400_v27  ;;  %1569 = vmatprep.subr.bf16.mxu1 %v4402_v28  ;;  %v4455_v63 = vld [vmem:[%s5276_s29 + $0xdc] ss:$48 sps:$4 sm:$0xff]   ;;  %v4450_v0 = vld [vmem:[%s5276_s29 + $0xd0] ss:$48 sps:$4 sm:$0xff]   ;;  %v4453_v1 = vld [vmem:[%s5276_s29 + $0xd8] ss:$48 sps:$4 sm:$0xff]  }
  0x8c   : > { %v4458_v2 = vld [vmem:[%s5276_s29 + $0x134] ss:$48 sps:$4 sm:$0xff]   ;;  %v4461_v3 = vld [vmem:[%s5276_s29 + $0x13c] ss:$48 sps:$4 sm:$0xff]   ;;  %v4456_v4 = vld [vmem:[%s5276_s29 + $0x130] ss:$48 sps:$4 sm:$0xff]  }
  0x8d   : > { %v4459_v6 = vld [vmem:[%s5276_s29 + $0x138] ss:$48 sps:$4 sm:$0xff]   ;;  %v4464_v7 = vld [vmem:[%s5276_s29 + $0x194] ss:$48 sps:$4 sm:$0xff]   ;;  %v4467_v8 = vld [vmem:[%s5276_s29 + $0x19c] ss:$48 sps:$4 sm:$0xff]  }
  0x8e   : > { %1529 = vmatpush1.bf16.msra.mxu0 %v4404_v29  ;;  %1570 = vmatpush1.bf16.msra.mxu1 %v4405_v30  ;;  %v4462_v9 = vld [vmem:[%s5276_s29 + $0x190] ss:$48 sps:$4 sm:$0xff]   ;;  %v4465_v10 = vld [vmem:[%s5276_s29 + $0x198] ss:$48 sps:$4 sm:$0xff]   ;;  %v4470_v11 = vld [vmem:[%s5276_s29 + $0x1f4] ss:$48 sps:$4 sm:$0xff]  }
  0x8f   : > { %1530 = vmatprep.subr.bf16.mxu0 %v4406_v31  ;;  %1571 = vmatprep.subr.bf16.mxu1 %v4408_v32  ;;  %v4473_v12 = vld [vmem:[%s5276_s29 + $0x1fc] ss:$48 sps:$4 sm:$0xff]   ;;  %v4468_v13 = vld [vmem:[%s5276_s29 + $0x1f0] ss:$48 sps:$4 sm:$0xff]   ;;  %v4471_v14 = vld [vmem:[%s5276_s29 + $0x1f8] ss:$48 sps:$4 sm:$0xff]  }
  0x90   : > { %v4476_v15 = vld [vmem:[%s5276_s29 + $0x254] ss:$48 sps:$4 sm:$0xff]   ;;  %v4479_v16 = vld [vmem:[%s5276_s29 + $0x25c] ss:$48 sps:$4 sm:$0xff]   ;;  %v4474_v17 = vld [vmem:[%s5276_s29 + $0x250] ss:$48 sps:$4 sm:$0xff]  }
  0x91   : > { %v4477_v18 = vld [vmem:[%s5276_s29 + $0x258] ss:$48 sps:$4 sm:$0xff]   ;;  %v4482_v19 = vld [vmem:[%s5276_s29 + $0x2b4] ss:$48 sps:$4 sm:$0xff]   ;;  %v4485_v20 = vld [vmem:[%s5276_s29 + $0x2bc] ss:$48 sps:$4 sm:$0xff]  }
  0x92   : > { %1531 = vmatpush1.bf16.msra.mxu0 %v4410_v33  ;;  %1572 = vmatpush1.bf16.msra.mxu1 %v4411_v34  ;;  %v4480_v21 = vld [vmem:[%s5276_s29 + $0x2b0] ss:$48 sps:$4 sm:$0xff]   ;;  %v4483_v22 = vld [vmem:[%s5276_s29 + $0x2b8] ss:$48 sps:$4 sm:$0xff]   ;;  %v4488_v23 = vld [vmem:[%s5276_s29 + $0x314] ss:$48 sps:$4 sm:$0xff]  }
  0x93   : > { %1532 = vmatprep.subr.bf16.mxu0 %v4412_v35  ;;  %1573 = vmatprep.subr.bf16.mxu1 %v4414_v36  ;;  %v4491_v24 = vld [vmem:[%s5276_s29 + $0x31c] ss:$48 sps:$4 sm:$0xff]   ;;  %v4486_v25 = vld [vmem:[%s5276_s29 + $0x310] ss:$48 sps:$4 sm:$0xff]   ;;  %v4489_v26 = vld [vmem:[%s5276_s29 + $0x318] ss:$48 sps:$4 sm:$0xff]  }
  0x94   : > { %v4494_v27 = vld [vmem:[%s5276_s29 + $0x374] ss:$48 sps:$4 sm:$0xff]   ;;  %v4497_v28 = vld [vmem:[%s5276_s29 + $0x37c] ss:$48 sps:$4 sm:$0xff]   ;;  %v4492_v29 = vld [vmem:[%s5276_s29 + $0x370] ss:$48 sps:$4 sm:$0xff]  }
  0x95   : > { %v4498_v30 = vld [vmem:[%s5276_s29 + $0x3d4] ss:$48 sps:$4 sm:$0x7f]   ;;  %v4500_v31 = vld [vmem:[%s5276_s29 + $0x3dc] ss:$48 sps:$4 sm:$0x7f]  }
  0x96   : > { %1533 = vmatpush1.bf16.msra.mxu0 %v4416_v37  ;;  %1574 = vmatpush1.bf16.msra.mxu1 %v4417_v38  ;;  %v4495_v32 = vld [vmem:[%s5276_s29 + $0x378] ss:$48 sps:$4 sm:$0xff]   ;;  %v4502_v33 = vld [vmem:[%s5276_s29 + $0x3d0] ss:$48 sps:$4 sm:$0x7f]  }
  0x97   : > { %1534 = vmatprep.subr.bf16.mxu0 %v4418_v39  ;;  %1575 = vmatprep.subr.bf16.mxu1 %v4420_v40  ;;  %v4503_v34 = vld [vmem:[%s5276_s29 + $0x3d8] ss:$48 sps:$4 sm:$0x7f]   ;;  %v1495_v35 = vsel %vm1481_vm1, %v4502_v33, 0  ;;  %v4506_v37 = vld [vmem:[%s5276_s29 + $0x24] ss:$48 sps:$4 sm:$0xff]  }
  0x98   : > { %v1501_v36 = vsel %vm1481_vm1, %v4503_v34, 0  ;;  %v4509_v38 = vld [vmem:[%s5276_s29 + $0x2c] ss:$48 sps:$4 sm:$0xff]   ;;  %v4504_v39 = vld [vmem:[%s5276_s29 + $0x20] ss:$48 sps:$4 sm:$0xff]  }
  0x99   : > { %v4507_v40 = vld [vmem:[%s5276_s29 + $0x28] ss:$48 sps:$4 sm:$0xff]   ;;  %v4524_v50 = vld [vmem:[%s5276_s29 + $0x144] ss:$48 sps:$4 sm:$0xff]  }
  0x9a   : > { %1535 = vmatpush1.bf16.msra.mxu0 %v4422_v41  ;;  %1576 = vmatpush1.bf16.msra.mxu1 %v4423_v42  ;;  %v817_v41 = vld [vmem:[%s6136_s2] sm:$0xff]  ;;  %v4519_v49 = vld [vmem:[%s5276_s29 + $0xe8] ss:$48 sps:$4 sm:$0xff]  }
  0x9b   : > { %1536 = vmatprep.subr.bf16.mxu0 %v4424_v43  ;;  %1577 = vmatprep.subr.bf16.mxu1 %v4426_v44  ;;  %v4512_v42 = vld [vmem:[%s5276_s29 + $0x84] ss:$48 sps:$4 sm:$0xff]   ;;  %v4515_v43 = vld [vmem:[%s5276_s29 + $0x8c] ss:$48 sps:$4 sm:$0xff]   ;;  %v4510_v44 = vld [vmem:[%s5276_s29 + $0x80] ss:$48 sps:$4 sm:$0xff]  }
  0x9c   : > { %820 = vperm.xlu0 %4369, %v817_v41  }
  0x9e   : > { %1537 = vmatpush1.bf16.msra.mxu0 %v4428_v45  ;;  %1578 = vmatpush1.bf16.msra.mxu1 %v4429_v46  ;;  %v4513_v45 = vld [vmem:[%s5276_s29 + $0x88] ss:$48 sps:$4 sm:$0xff]   ;;  %v4518_v46 = vld [vmem:[%s5276_s29 + $0xe4] ss:$48 sps:$4 sm:$0xff]  }
  0x9f   : > { %3931 = vmatprep.subr.msk.bf16.mxu0 %vm1481_vm1, %v4430_v47  ;;  %3933 = vmatprep.subr.msk.bf16.mxu1 %vm1481_vm1, %v4432_v48  ;;  %v4521_v47 = vld [vmem:[%s5276_s29 + $0xec] ss:$48 sps:$4 sm:$0xff]   ;;  %v4516_v48 = vld [vmem:[%s5276_s29 + $0xe0] ss:$48 sps:$4 sm:$0xff]  }
  0xa2   : > { %1539 = vmatpush1.bf16.msra.mxu0 %v1483_v52  ;;  %1580 = vmatpush1.bf16.msra.mxu1 %v1489_v53  ;;  %v4522_v52 = vld [vmem:[%s5276_s29 + $0x140] ss:$48 sps:$4 sm:$0xff]   ;;  %v4525_v53 = vld [vmem:[%s5276_s29 + $0x148] ss:$48 sps:$4 sm:$0xff]  }
  0xa3   : > { %1600 = vmatprep.subr.bf16.mxu0 %v4440_v51  ;;  %1641 = vmatprep.subr.bf16.mxu1 %v4443_v54  ;;  %v4527_v51 = vld [vmem:[%s5276_s29 + $0x14c] ss:$48 sps:$4 sm:$0xff]  }
  0xa4   : > { %v4533_v54 = vld [vmem:[%s5276_s29 + $0x1ac] ss:$48 sps:$4 sm:$0xff]  }
  0xa5   : > { %1551 = vmatmul.mubr.bf16.vlgmr.msra.gmra.mrb[0].mxu0 %v5330_v55  ;;  %1592 = vmatmul.mubr.bf16.vlgmr.msra.gmra.mrb[0].mxu1 %v5330_v55 }
  0xa6   : > { %1601 = vmatpush1.bf16.msra.mxu0 %v4438_v56  ;;  %1642 = vmatpush1.bf16.msra.mxu1 %v4441_v57  ;;  %v4528_v56 = vld [vmem:[%s5276_s29 + $0x1a0] ss:$48 sps:$4 sm:$0xff]   ;;  %v4531_v57 = vld [vmem:[%s5276_s29 + $0x1a8] ss:$48 sps:$4 sm:$0xff]  }
  0xa7   : > { %1602 = vmatprep.subr.bf16.mxu0 %v4446_v58  ;;  %1643 = vmatprep.subr.bf16.mxu1 %v4449_v59  ;;  %v4536_v58 = vld [vmem:[%s5276_s29 + $0x204] ss:$48 sps:$4 sm:$0xff]   ;;  %v4539_v59 = vld [vmem:[%s5276_s29 + $0x20c] ss:$48 sps:$4 sm:$0xff]  }
  0xa8   : > { %3936 = vmatprep.mubr.msk.bf16.mxu0 %vm1477_vm0, %v5270_v5  ;;  %3938 = vmatprep.mubr.msk.bf16.mxu1 %vm1477_vm0, %v5270_v5 }
  0xaa   : > { %1603 = vmatpush1.bf16.msra.mxu0 %v4444_v60  ;;  %1644 = vmatpush1.bf16.msra.mxu1 %v4447_v61  ;;  %v4534_v60 = vld [vmem:[%s5276_s29 + $0x200] ss:$48 sps:$4 sm:$0xff]   ;;  %v4537_v61 = vld [vmem:[%s5276_s29 + $0x208] ss:$48 sps:$4 sm:$0xff]  }
  0xab   : > { %1604 = vmatprep.subr.bf16.mxu0 %v4452_v62  ;;  %1645 = vmatprep.subr.bf16.mxu1 %v4455_v63  ;;  %v4542_v62 = vld [vmem:[%s5276_s29 + $0x264] ss:$48 sps:$4 sm:$0xff]   ;;  %v4545_v63 = vld [vmem:[%s5276_s29 + $0x26c] ss:$48 sps:$4 sm:$0xff]  }
  0xae   : > { %1605 = vmatpush1.bf16.msra.mxu0 %v4450_v0  ;;  %1646 = vmatpush1.bf16.msra.mxu1 %v4453_v1  ;;  %v4540_v0 = vld [vmem:[%s5276_s29 + $0x260] ss:$48 sps:$4 sm:$0xff]   ;;  %v4543_v1 = vld [vmem:[%s5276_s29 + $0x268] ss:$48 sps:$4 sm:$0xff]  }
  0xaf   : > { %1606 = vmatprep.subr.bf16.mxu0 %v4458_v2  ;;  %1647 = vmatprep.subr.bf16.mxu1 %v4461_v3  ;;  %v4548_v2 = vld [vmem:[%s5276_s29 + $0x2c4] ss:$48 sps:$4 sm:$0xff]   ;;  %v4551_v3 = vld [vmem:[%s5276_s29 + $0x2cc] ss:$48 sps:$4 sm:$0xff]  }
  0xb2   : > { %1607 = vmatpush1.bf16.msra.mxu0 %v4456_v4  ;;  %1648 = vmatpush1.bf16.msra.mxu1 %v4459_v6  ;;  %v4546_v4 = vld [vmem:[%s5276_s29 + $0x2c0] ss:$48 sps:$4 sm:$0xff]   ;;  %v4549_v6 = vld [vmem:[%s5276_s29 + $0x2c8] ss:$48 sps:$4 sm:$0xff]  }
  0xb3   : > { %1608 = vmatprep.subr.bf16.mxu0 %v4464_v7  ;;  %1649 = vmatprep.subr.bf16.mxu1 %v4467_v8  ;;  %v4554_v7 = vld [vmem:[%s5276_s29 + $0x324] ss:$48 sps:$4 sm:$0xff]   ;;  %v4557_v8 = vld [vmem:[%s5276_s29 + $0x32c] ss:$48 sps:$4 sm:$0xff]  }
  0xb6   : > { %1609 = vmatpush1.bf16.msra.mxu0 %v4462_v9  ;;  %1650 = vmatpush1.bf16.msra.mxu1 %v4465_v10  ;;  %v4552_v9 = vld [vmem:[%s5276_s29 + $0x320] ss:$48 sps:$4 sm:$0xff]   ;;  %v4555_v10 = vld [vmem:[%s5276_s29 + $0x328] ss:$48 sps:$4 sm:$0xff]  }
  0xb7   : > { %1610 = vmatprep.subr.bf16.mxu0 %v4470_v11  ;;  %1651 = vmatprep.subr.bf16.mxu1 %v4473_v12  ;;  %v4560_v11 = vld [vmem:[%s5276_s29 + $0x384] ss:$48 sps:$4 sm:$0xff]   ;;  %v4563_v12 = vld [vmem:[%s5276_s29 + $0x38c] ss:$48 sps:$4 sm:$0xff]  }
  0xba   : > { %1611 = vmatpush1.bf16.msra.mxu0 %v4468_v13  ;;  %1652 = vmatpush1.bf16.msra.mxu1 %v4471_v14  ;;  %v4558_v13 = vld [vmem:[%s5276_s29 + $0x380] ss:$48 sps:$4 sm:$0xff]   ;;  %v4561_v14 = vld [vmem:[%s5276_s29 + $0x388] ss:$48 sps:$4 sm:$0xff]  }
  0xbb   : > { %1612 = vmatprep.subr.bf16.mxu0 %v4476_v15  ;;  %1653 = vmatprep.subr.bf16.mxu1 %v4479_v16  ;;  %v4564_v15 = vld [vmem:[%s5276_s29 + $0x3e4] ss:$48 sps:$4 sm:$0x7f]   ;;  %v4566_v16 = vld [vmem:[%s5276_s29 + $0x3ec] ss:$48 sps:$4 sm:$0x7f]  }
  0xbe   : > { %1613 = vmatpush1.bf16.msra.mxu0 %v4474_v17  ;;  %1654 = vmatpush1.bf16.msra.mxu1 %v4477_v18  ;;  %v4568_v17 = vld [vmem:[%s5276_s29 + $0x3e0] ss:$48 sps:$4 sm:$0x7f]   ;;  %v4569_v18 = vld [vmem:[%s5276_s29 + $0x3e8] ss:$48 sps:$4 sm:$0x7f]  }
  0xbf   : > { %1614 = vmatprep.subr.bf16.mxu0 %v4482_v19  ;;  %1655 = vmatprep.subr.bf16.mxu1 %v4485_v20  ;;  %v1507_v19 = vsel %vm1481_vm1, %v4568_v17, 0  ;;  %v1513_v20 = vsel %vm1481_vm1, %v4569_v18, 0 }
  0xc2   : > { %1615 = vmatpush1.bf16.msra.mxu0 %v4480_v21  ;;  %1656 = vmatpush1.bf16.msra.mxu1 %v4483_v22 }
  0xc3   : > { %1616 = vmatprep.subr.bf16.mxu0 %v4488_v23  ;;  %1657 = vmatprep.subr.bf16.mxu1 %v4491_v24 }
  0xc6   : > { %1617 = vmatpush1.bf16.msra.mxu0 %v4486_v25  ;;  %1658 = vmatpush1.bf16.msra.mxu1 %v4489_v26 }
  0xc7   : > { %1618 = vmatprep.subr.bf16.mxu0 %v4494_v27  ;;  %1659 = vmatprep.subr.bf16.mxu1 %v4497_v28 }
  0xca   : > { %1619 = vmatpush1.bf16.msra.mxu0 %v4492_v29  ;;  %1660 = vmatpush1.bf16.msra.mxu1 %v4495_v32 }
  0xcb   : > { %3935 = vmatprep.subr.msk.bf16.mxu0 %vm1481_vm1, %v4498_v30  ;;  %3937 = vmatprep.subr.msk.bf16.mxu1 %vm1481_vm1, %v4500_v31 }
  0xce   : > { %1621 = vmatpush1.bf16.msra.mxu0 %v1495_v35  ;;  %1662 = vmatpush1.bf16.msra.mxu1 %v1501_v36 }
  0xcf   : > { %1682 = vmatprep.subr.bf16.mxu0 %v4506_v37  ;;  %1723 = vmatprep.subr.bf16.mxu1 %v4509_v38 }
  0xd1   : > { %1633 = vmatmul.mubr.bf16.vlgmr.msra.gmra.mrb[4].mxu0 %v5330_v55  ;;  %1674 = vmatmul.mubr.bf16.vlgmr.msra.gmra.mrb[4].mxu1 %v5330_v55 }
  0xd2   : > { %1683 = vmatpush1.bf16.msra.mxu0 %v4504_v39  ;;  %1724 = vmatpush1.bf16.msra.mxu1 %v4507_v40 }
  0xd3   : > { %1684 = vmatprep.subr.bf16.mxu0 %v4512_v42  ;;  %1725 = vmatprep.subr.bf16.mxu1 %v4515_v43 }
  0xd4   : > { %3940 = vmatprep.mubr.msk.bf16.mxu0 %vm1477_vm0, %v5270_v5  ;;  %3942 = vmatprep.mubr.msk.bf16.mxu1 %vm1477_vm0, %v5270_v5  ;;  %v4530_v5 = vld [vmem:[%s5276_s29 + $0x1a4] ss:$48 sps:$4 sm:$0xff]  }
  0xd6   : > { %1685 = vmatpush1.bf16.msra.mxu0 %v4510_v44  ;;  %1726 = vmatpush1.bf16.msra.mxu1 %v4513_v45 }
  0xd7   : > { %1686 = vmatprep.subr.bf16.mxu0 %v4518_v46  ;;  %1727 = vmatprep.subr.bf16.mxu1 %v4521_v47 }
  0xda   : > { %1687 = vmatpush1.bf16.msra.mxu0 %v4516_v48  ;;  %1728 = vmatpush1.bf16.msra.mxu1 %v4519_v49 }
  0xdb   : > { %1688 = vmatprep.subr.bf16.mxu0 %v4524_v50  ;;  %1729 = vmatprep.subr.bf16.mxu1 %v4527_v51 }
  0xde   : > { %1689 = vmatpush1.bf16.msra.mxu0 %v4522_v52  ;;  %1730 = vmatpush1.bf16.msra.mxu1 %v4525_v53 }
  0xdf   : > { %1690 = vmatprep.subr.bf16.mxu0 %v4530_v5  ;;  %1731 = vmatprep.subr.bf16.mxu1 %v4533_v54 }
  0xe2   : > { %1691 = vmatpush1.bf16.msra.mxu0 %v4528_v56  ;;  %1732 = vmatpush1.bf16.msra.mxu1 %v4531_v57 }
  0xe3   : > { %1692 = vmatprep.subr.bf16.mxu0 %v4536_v58  ;;  %1733 = vmatprep.subr.bf16.mxu1 %v4539_v59 }
  0xe6   : > { %1693 = vmatpush1.bf16.msra.mxu0 %v4534_v60  ;;  %1734 = vmatpush1.bf16.msra.mxu1 %v4537_v61 }
  0xe7   : > { %1694 = vmatprep.subr.bf16.mxu0 %v4542_v62  ;;  %1735 = vmatprep.subr.bf16.mxu1 %v4545_v63 }
  0xea   : > { %1695 = vmatpush1.bf16.msra.mxu0 %v4540_v0  ;;  %1736 = vmatpush1.bf16.msra.mxu1 %v4543_v1 }
  0xeb   : > { %1696 = vmatprep.subr.bf16.mxu0 %v4548_v2  ;;  %1737 = vmatprep.subr.bf16.mxu1 %v4551_v3 }
  0xee   : > { %1697 = vmatpush1.bf16.msra.mxu0 %v4546_v4  ;;  %1738 = vmatpush1.bf16.msra.mxu1 %v4549_v6 }
  0xef   : > { %1698 = vmatprep.subr.bf16.mxu0 %v4554_v7  ;;  %1739 = vmatprep.subr.bf16.mxu1 %v4557_v8 }
  0xf2   : > { %1699 = vmatpush1.bf16.msra.mxu0 %v4552_v9  ;;  %1740 = vmatpush1.bf16.msra.mxu1 %v4555_v10 }
  0xf3   : > { %1700 = vmatprep.subr.bf16.mxu0 %v4560_v11  ;;  %1741 = vmatprep.subr.bf16.mxu1 %v4563_v12 }
  0xf6   : > { %1701 = vmatpush1.bf16.msra.mxu0 %v4558_v13  ;;  %1742 = vmatpush1.bf16.msra.mxu1 %v4561_v14 }
  0xf7   : > { %3939 = vmatprep.subr.msk.bf16.mxu0 %vm1481_vm1, %v4564_v15  ;;  %3941 = vmatprep.subr.msk.bf16.mxu1 %vm1481_vm1, %v4566_v16 }
  0xfa   : > { %1703 = vmatpush1.bf16.msra.mxu0 %v1507_v19  ;;  %1744 = vmatpush1.bf16.msra.mxu1 %v1513_v20 }
  0xfd   : > { %1715 = vmatmul.mubr.bf16.vlgmr.msra.gmra.mrb[8].mxu0 %v5330_v55  ;;  %1756 = vmatmul.mubr.bf16.vlgmr.msra.gmra.mrb[8].mxu1 %v5330_v55 }
 0x11b   : > { %v821_v21 = vpop.permute.xlu0 %820 }
 0x178   : > { %v1552_v22 = vpop.f32.mrb[0].mxu0  ;;  %v1593_v23 = vpop.f32.mrb[0].mxu1 }
 0x179   : > { %v1553_v24 = vadd.f32 %v1552_v22, %v821_v21  ;;  %v5443_v25 = vadd.f32 %v1593_v23, %v821_v21  ;;  %v1554_v26 = vpop.f32.mrb[1].mxu0  ;;  %v1595_v27 = vpop.f32.mrb[1].mxu1 }
 0x17a   : > { %v1555_v28 = vadd.f32 %v1554_v26, %v821_v21  ;;  %v5445_v29 = vadd.f32 %v1595_v27, %v821_v21  ;;  %v1556_v30 = vpop.f32.mrb[2].mxu0  ;;  %v1597_v31 = vpop.f32.mrb[2].mxu1 }
 0x17b   : > { %v5447_v32 = vmax.f32 %v1553_v24, 0.0  ;;  %v1766_v33 = vmax.f32 %v5443_v25, 0.0  ;;  %v1557_v34 = vpop.f32.mrb[3].mxu0  ;;  %v1598_v35 = vpop.f32.mrb[3].mxu1 }
 0x17c   : > { %v5450_v55 = vmax.f32 %v1555_v28, 0.0  ;;  %v1767_v36 = vmax.f32 %v5445_v29, 0.0 }
 0x17d   : > { %1780 = vst [vmem:[#allocation2 + $0x10] sm:$0xff] (!%p3943_p3), %v5447_v32  ;;  %1782 = vst [vmem:[#allocation2 + $0x20] sm:$0xff] (!%p3943_p3), %v1766_v33 }
 0x17e   : > { %1781 = vst [vmem:[#allocation2 + $0x18] sm:$0xff] (!%p3943_p3), %v5450_v55  ;;  %1783 = vst [vmem:[#allocation2 + $0x28] sm:$0xff] (!%p3943_p3), %v1767_v36 }
 0x1a4   : > { %v1634_v37 = vpop.f32.mrb[4].mxu0  ;;  %v1675_v38 = vpop.f32.mrb[4].mxu1 }
 0x1a5   : > { %v1635_v39 = vadd.f32 %v1634_v37, %v821_v21  ;;  %v1676_v40 = vadd.f32 %v1675_v38, %v821_v21  ;;  %v1636_v41 = vpop.f32.mrb[5].mxu0  ;;  %v1677_v42 = vpop.f32.mrb[5].mxu1 }
 0x1a6   : > { %v1637_v43 = vadd.f32 %v1636_v41, %v821_v21  ;;  %v1678_v44 = vadd.f32 %v1677_v42, %v821_v21  ;;  %v1638_v45 = vpop.f32.mrb[6].mxu0  ;;  %v1679_v46 = vpop.f32.mrb[6].mxu1 }
 0x1a7   : > { %v5453_v47 = vmax.f32 %v1635_v39, 0.0  ;;  %v5455_v48 = vmax.f32 %v1676_v40, 0.0  ;;  %v1639_v49 = vpop.f32.mrb[7].mxu0  ;;  %v1680_v50 = vpop.f32.mrb[7].mxu1 }
 0x1a8   : > { %v5457_v51 = vmax.f32 %v1637_v43, 0.0  ;;  %v5459_v52 = vmax.f32 %v1678_v44, 0.0 }
 0x1a9   : > { %1784 = vst [vmem:[#allocation2 + $0x30] sm:$0xff] (!%p3943_p3), %v5453_v47  ;;  %1786 = vst [vmem:[#allocation2 + $0x40] sm:$0xff] (!%p3943_p3), %v5455_v48 }
 0x1aa   : > { %1785 = vst [vmem:[#allocation2 + $0x38] sm:$0xff] (!%p3943_p3), %v5457_v51  ;;  %1787 = vst [vmem:[#allocation2 + $0x48] sm:$0xff] (!%p3943_p3), %v5459_v52 }
 0x1ce   : > { %1779 = sbr.rel (%p3943_p3) target bundleno = 471 (0x1d7), region = 91 }
 0x1d0   : > { %v1716_v53 = vpop.f32.mrb[8].mxu0  ;;  %v1757_v5 = vpop.f32.mrb[8].mxu1 }
 0x1d1   : > { %v5461_v54 = vadd.f32 %v1716_v53, %v821_v21  ;;  %v1758_v56 = vadd.f32 %v1757_v5, %v821_v21  ;;  %v1718_v57 = vpop.f32.mrb[9].mxu0  ;;  %v1759_v58 = vpop.f32.mrb[9].mxu1 }
 0x1d2   : > { %v5463_v59 = vadd.f32 %v1718_v57, %v821_v21  ;;  %v1760_v60 = vadd.f32 %v1759_v58, %v821_v21  ;;  %v1720_v61 = vpop.f32.mrb[10].mxu0  ;;  %v1761_v62 = vpop.f32.mrb[10].mxu1 }
 0x1d3   : > { %v1772_v63 = vmax.f32 %v5461_v54, 0.0  ;;  %v5466_v0 = vmax.f32 %v1758_v56, 0.0  ;;  %v1721_v1 = vpop.f32.mrb[11].mxu0  ;;  %v1762_v2 = vpop.f32.mrb[11].mxu1 }
 0x1d4   : > { %v1773_v3 = vmax.f32 %v5463_v59, 0.0  ;;  %v1775_v4 = vmax.f32 %v1760_v60, 0.0 }
 0x1d5   : > { %1788 = vst [vmem:[#allocation2 + $0x50] sm:$0xff] %v1772_v63  ;;  %1790 = vst [vmem:[#allocation2 + $0x60] sm:$0xff] %v5466_v0 }
 0x1d6   : > { %1789 = vst [vmem:[#allocation2 + $0x58] sm:$0xff] %v1773_v3  ;;  %1791 = vst [vmem:[#allocation2 + $0x68] sm:$0xff] %v1775_v4 }
 0x1d7 PF: > { %p3944_p4 = scmp.ne.s32.totalorder %s4808_s22, 1 }
 0x1d8   : > { %v5488_v6 = vld [vmem:[#allocation2 + $0x10] sm:$0xff] (!%p3944_p4)  ;;  %s4827_s12 = smov (!%p3944_p4), 127   ;;  %v5491_v7 = vld [vmem:[#allocation2 + $0x18] sm:$0xff] (!%p3944_p4)  ;;  %s4828_s14 = smov (!%p3944_p4), 1   ;;  %v5497_v9 = vld [vmem:[#allocation2 + $0x48] sm:$0xff] (!%p3944_p4)  ;;  %v1899_v14 = vpack.c.bf16 (!%p3944_p4), %v5447_v32, %v5447_v32  ;;  %v4829_v15 = vmov (!%p3944_p4), 0   ;;  %v1900_v23 = vpack.c.bf16 (!%p3944_p4), %v5450_v55, %v5450_v55  ;;  %v1888_v24 = vpack.c.bf16 (!%p3944_p4), %v5459_v52, %v5457_v51 }
 0x1d9   : > { %1795 = sbr.rel (%p3944_p4) target bundleno = 1731 (0x6c3), region = 95  ;;  %1834 = vrot.lane.b32.xlu1 (!%p3944_p4), %v5488_v6, %s4827_s12  ;;  %1817 = vrot.lane.b32.xlu0 (!%p3944_p4), %v5466_v0, %s4828_s14  ;;  %v5495_v8 = vld [vmem:[#allocation2 + $0x38] sm:$0xff] (!%p3944_p4)  ;;  %v5501_v11 = vld [vmem:[#allocation2 + $0x30] sm:$0xff] (!%p3944_p4)  ;;  %v5503_v12 = vld [vmem:[#allocation2 + $0x40] sm:$0xff] (!%p3944_p4)  ;;  %vm1916_vm2 = vcmask (!%p3944_p4), 1043456   ;;  %vm1912_vm3 = vcmask (!%p3944_p4), 326656   ;;  %v1887_v27 = vpack.c.bf16 (!%p3944_p4), %v5455_v48, %v5453_v47  ;;  %v1896_v28 = vpack.c.bf16 (!%p3944_p4), %v1775_v4, %v1773_v3 }
 0x1da   : > { %v1884_v10 = vpack.c.bf16 (!%p3944_p4), %v5497_v9, %v5495_v8  ;;  %2014 = vmatprep.mubr.bf16.mxu1 (!%p3944_p4), %v4829_v15  ;;  %1973 = vmatprep.mubr.bf16.mxu0 (!%p3944_p4), %v4829_v15  ;;  %v1883_v16 = vpack.c.bf16 (!%p3944_p4), %v5503_v12, %v5501_v11  ;;  %v1924_v22 = vsel (!%p3944_p4), %vm1916_vm2, %v1899_v14, 0  ;;  %v5530_v26 = vld [vmem:[%s6107_s3] sm:$0xf] (!%p3944_p4)  ;;  %v1895_v30 = vpack.c.bf16 (!%p3944_p4), %v5466_v0, %v1772_v63  ;;  %v1854_v40 = vld [vmem:[#allocation2 + $0x28] sm:$0xff] (!%p3944_p4)  ;;  %s6139_s17 = sld [smem:[#allocation15_spill]] (!%p3944_p4) }
 0x1db   : > { %4570 = vset.pattern.permute.xlu0 (!%p3944_p4), %v4829_v15  ;;  %4576 = vset.pattern.permute.xlu1 (!%p3944_p4), %v4829_v15  ;;  %v1906_v31 = vld [vmem:[%s6108_s4] sm:$0xff] (!%p3944_p4)  ;;  %v1808_v34 = vlaneseq (!%p3944_p4)  ;;  %v1890_v41 = vpack.c.bf16 (!%p3944_p4), %v5495_v8, %v1854_v40  ;;  %vm4830_vm9 = vmmov (!%p3944_p4), 1   ;;  %v1898_v61 = vpack.c.bf16 (!%p3944_p4), %v5497_v9, %v5497_v9  ;;  %v4588_v59 = vld [vmem:[%s6113_s9 + $0xc8] sm:$0xff] (!%p3944_p4)  }
 0x1dc   : > { %1982 = vmatprep.subr.bf16.mxu1 (!%p3944_p4), %v1884_v10  ;;  %v1853_v50 = vld [vmem:[#allocation2 + $0x20] sm:$0xff] (!%p3944_p4)  ;;  %v1897_v62 = vpack.c.bf16 (!%p3944_p4), %v5503_v12, %v5503_v12  ;;  %v1894_v2 = vpack.c.bf16 (!%p3944_p4), %v5457_v51, %v1767_v36  ;;  %v1893_v3 = vpack.c.bf16 (!%p3944_p4), %v5453_v47, %v1766_v33  ;;  %vm2136_vm11 = vcmask (!%p3944_p4), 195584  }
 0x1dd   : > { %v1860_v13 = vld [vmem:[#allocation2 + $0x58] sm:$0xff] (!%p3944_p4)  ;;  %v5511_v17 = vld [vmem:[#allocation2 + $0x68] sm:$0xff] (!%p3944_p4)  ;;  %1836 = vrot.lane.b32.xlu1 (!%p3944_p4), %v5491_v7, %s4827_s12  ;;  %1819 = vrot.lane.b32.xlu0 (!%p3944_p4), %v1775_v4, %s4828_s14  ;;  %v5543_v35 = vand.u32 (!%p3944_p4), 127, %v1808_v34  ;;  %v1889_v58 = vpack.c.bf16 (!%p3944_p4), %v5501_v11, %v1853_v50  ;;  %vm3701_vm12 = vcmask (!%p3944_p4), 253952  }
 0x1de   : > { %v1859_v18 = vld [vmem:[#allocation2 + $0x50] sm:$0xff] (!%p3944_p4)  ;;  %v5513_v19 = vld [vmem:[#allocation2 + $0x60] sm:$0xff] (!%p3944_p4)  ;;  %v1892_v20 = vpack.c.bf16 (!%p3944_p4), %v5511_v17, %v1860_v13  ;;  %1983 = vmatpush1.bf16.msra.mxu1 (!%p3944_p4), %v1883_v16  ;;  %v1918_v63 = vsel (!%p3944_p4), %vm1916_vm2, %v1897_v62, 0  ;;  %v1886_v0 = vpack.c.bf16 (!%p3944_p4), %v5450_v55, %v5511_v17  ;;  %v1901_v55 = vpack.c.bf16 (!%p3944_p4), %v5455_v48, %v5455_v48 }
 0x1df   : > { %v1891_v21 = vpack.c.bf16 (!%p3944_p4), %v5513_v19, %v1859_v18  ;;  %v1810_v37 = vadd.s32 (!%p3944_p4), 128, %v5543_v35  ;;  %vm1838_vm4 = vcmp.lt.s32.totalorder (!%p3944_p4), %v5543_v35, 127  ;;  %vm1821_vm5 = vcmp.lt.s32.totalorder (!%p3944_p4), %v5543_v35, 1  ;;  %v2130_v16 = vld [vmem:[%s6110_s6] sm:$0xff] (!%p3944_p4) }
 0x1e0   : > { %1984 = vmatprep.subr.bf16.mxu1 %v1892_v20  ;;  %vm1811_vm7 = vcmp.eq.s32.totalorder %v5543_v35, 0  ;;  %v1885_v1 = vpack.c.bf16 %v5447_v32, %v5513_v19  ;;  %v1902_v32 = vpack.c.bf16 %v5459_v52, %v5459_v52  ;;  %v1930_v29 = vsel %vm1916_vm2, %v1901_v55, 0  ;;  %v2251_v18 = vld [vmem:[%s6112_s8] sm:$0xff] }
 0x1e1   : > { %1909 = vperm.xlu0 %4570, %v1906_v31   ;;  %vm1814_vm6 = vcmp.eq.s32.totalorder %v1810_v37, 255  ;;  %vm4710_vm8 = vmneg %vm1811_vm7  ;;  %v2250_v35 = vld [vmem:[%s6111_s7] sm:$0xf] }
 0x1e2   : > { %1985 = vmatpush1.bf16.msra.mxu1 %v1891_v21  ;;  %vm5560_vm10 = vmpackc.low %vm4830_vm9, %vm4710_vm8 }
 0x1e3   : > { %3947 = vmatprep.subr.msk.bf16.mxu1 %vm1916_vm2, %v1900_v23 }
 0x1e6   : > { %1987 = vmatpush1.bf16.msra.mxu1 %v1924_v22 }
 0x1e7   : > { %2064 = vmatprep.subr.bf16.mxu1 %v1888_v24 }
 0x1e9   : > { %3948 = vmatmul.mubr.msk.bf16.vlgmr.msra.gmra.mrb[0].mxu1 %vm1912_vm3, %v5530_v26 }
 0x1ea   : > { %2065 = vmatpush1.bf16.msra.mxu1 %v1887_v27  ;;  %2096 = vmatprep.mubr.bf16.mxu1 %v4829_v15 }
 0x1eb   : > { %2066 = vmatprep.subr.bf16.mxu1 %v1896_v28 }
 0x1ee   : > { %2067 = vmatpush1.bf16.msra.mxu1 %v1895_v30 }
 0x24b   : > { %v1835_v38 = vpop.permute.xlu1 %1834  ;;  %v1818_v39 = vpop.permute.xlu0 %1817 }
 0x24f   : > { %v1837_v42 = vpop.permute.xlu1 %1836  ;;  %v1820_v43 = vpop.permute.xlu0 %1819 }
 0x250   : > { %v1839_v44 = vsel %vm1838_vm4, %v1835_v38, %v1837_v42  ;;  %v1840_v45 = vsel %vm1838_vm4, %v1837_v42, %v1835_v38  ;;  %v1822_v46 = vsel %vm1821_vm5, %v1818_v39, %v1820_v43  ;;  %v1823_v49 = vsel %vm1821_vm5, %v1820_v43, %v1818_v39  ;;  %v2129_v42 = vld [vmem:[%s6109_s5] sm:$0xf] }
 0x251   : > { %v1846_v53 = vsel %vm1814_vm6, 0.0, %v1840_v45  ;;  %v1903_v5 = vpack.c.bf16 %v1839_v44, %v1839_v44  ;;  %v1882_v54 = vpack.c.bf16 %v5491_v7, %v1822_v46  ;;  %v4712_v60 = vpack.c.bf16 %v5488_v6, %v1823_v49 }
 0x252   : > { %v1904_v56 = vpack.c.bf16 %v1846_v53, %v1846_v53 }
 0x253   : > { %v1936_v57 = vsel %vm1916_vm2, %v1903_v5, 0  ;;  %1941 = vmatprep.subr.bf16.mxu0 %v1882_v54 }
 0x254   : > { %3951 = vmatprep.subr.msk.bf16.mxu1 %vm1916_vm2, %v1904_v56  ;;  %4713 = vmatpush1.bf16.msk.msra.mxu0 %vm5560_vm10, %v4712_v60 }
 0x255   : > { %2069 = vmatpush1.bf16.msra.mxu1 %v1936_v57  ;;  %1943 = vmatprep.subr.bf16.mxu0 %v1890_v41 }
 0x258   : > { %3952 = vmatmul.mubr.msk.bf16.vlgmr.msra.gmra.mrb[4].mxu1 %vm1912_vm3, %v5530_v26  ;;  %1944 = vmatpush1.bf16.msra.mxu0 %v1889_v58 }
 0x259   : > { %3945 = vmatprep.subr.msk.bf16.mxu0 %vm1916_vm2, %v1898_v61  ;;  %2225 = vmatprep.mubr.bf16.mxu1 %v4829_v15 }
 0x25c   : > { %1946 = vmatpush1.bf16.msra.mxu0 %v1918_v63 }
 0x25d   : > { %2023 = vmatprep.subr.bf16.mxu0 %v1886_v0 }
 0x25f   : > { %3946 = vmatmul.mubr.msk.bf16.vlgmr.msra.gmra.mrb[0].mxu0 %vm1912_vm3, %v5530_v26 }
 0x260   : > { %2024 = vmatpush1.bf16.msra.mxu0 %v1885_v1  ;;  %2055 = vmatprep.mubr.bf16.mxu0 %v4829_v15  ;;  %v1910_v51 = vpop.permute.xlu0 %1909 }
 0x261   : > { %2025 = vmatprep.subr.bf16.mxu0 %v1894_v2 }
 0x264   : > { %2026 = vmatpush1.bf16.msra.mxu0 %v1893_v3 }
 0x265   : > { %3949 = vmatprep.subr.msk.bf16.mxu0 %vm1916_vm2, %v1902_v32 }
 0x268   : > { %2028 = vmatpush1.bf16.msra.mxu0 %v1930_v29 }
 0x26b   : > { %3950 = vmatmul.mubr.msk.bf16.vlgmr.msra.gmra.mrb[4].mxu0 %vm1912_vm3, %v5530_v26 }
 0x26c   : > { %2184 = vmatprep.mubr.bf16.mxu0 %v4829_v15 }
 0x2bc   : > { %v2016_v25 = vpop.f32.mrb[0].mxu1 }
 0x2bd   : > { %v2018_v33 = vpop.f32.mrb[1].mxu1  ;;  %v2017_v21 = vadd.f32 %v2016_v25, %v1910_v51 }
 0x2be   : > { %v2020_v36 = vpop.f32.mrb[2].mxu1  ;;  %v2019_v20 = vadd.f32 %v2018_v33, %v1910_v51  ;;  %v4582_v33 = vld [vmem:[%s6113_s9 + $0x40] sm:$0xff]  }
 0x2bf   : > { %v2021_v47 = vpop.f32.mrb[3].mxu1  ;;  %v2107_v34 = vmax.f32 %v2017_v21, 0.0  ;;  %v4586_v36 = vld [vmem:[%s6113_s9 + $0x48] sm:$0xff]  }
 0x2c0   : > { %v2108_v30 = vmax.f32 %v2019_v20, 0.0  ;;  %v4587_v47 = vld [vmem:[%s6113_s9 + $0x8] sm:$0xff]  }
 0x2c1   : > { %v2125_v60 = vpack.c.bf16 %v2107_v34, %v2107_v34 }
 0x2c2   : > { %v2126_v58 = vpack.c.bf16 %v2108_v30, %v2108_v30 }
 0x2c3   : > { %v2141_v61 = vsel %vm1916_vm2, %v2125_v60, 0  ;;  %v4616_v60 = vld [vmem:[%s6113_s9 + $0x1c0] sm:$0xff]  }
 0x32b   : > { %v2098_v52 = vpop.f32.mrb[4].mxu1 }
 0x32c   : > { %v2099_v4 = vadd.f32 %v2098_v52, %v1910_v51  ;;  %v2100_v6 = vpop.f32.mrb[5].mxu1  ;;  %v4591_v52 = vld [vmem:[%s6113_s9 + $0x10] sm:$0xff]  }
 0x32d   : > { %v2101_v48 = vadd.f32 %v2100_v6, %v1910_v51  ;;  %v2102_v7 = vpop.f32.mrb[6].mxu1  ;;  %v4595_v6 = vld [vmem:[%s6113_s9 + $0x18] sm:$0xff]  }
 0x32e   : > { %v2111_v8 = vmax.f32 %v2099_v4, 0.0  ;;  %v2103_v9 = vpop.f32.mrb[7].mxu1  ;;  %v4594_v4 = vld [vmem:[%s6113_s9 + $0x58] sm:$0xff]   ;;  %v4599_v7 = vld [vmem:[%s6113_s9 + $0x20] sm:$0xff]  }
 0x32f   : > { %v2112_v10 = vmax.f32 %v2101_v48, 0.0  ;;  %v4598_v48 = vld [vmem:[%s6113_s9 + $0x60] sm:$0xff]   ;;  %v4603_v9 = vld [vmem:[%s6113_s9 + $0x28] sm:$0xff]  }
 0x330   : > { %v2127_v40 = vpack.c.bf16 %v2111_v8, %v2111_v8 }
 0x331   : > { %v4571_v11 = vpack.i.bf16 %v2112_v10, %v2111_v8  ;;  %v2128_v39 = vpack.c.bf16 %v2112_v10, %v2112_v10  ;;  %v4602_v8 = vld [vmem:[%s6113_s9 + $0x68] sm:$0xff]  }
 0x332   : > { %v1975_v12 = vpop.f32.mrb[0].mxu0  ;;  %v2147_v41 = vsel %vm1916_vm2, %v2127_v40, 0  ;;  %v4596_v40 = vld [vmem:[%s6113_s9 + $0xd8] sm:$0xff]  }
 0x333   : > { %4572 = vrot.lane.b32.xlu1 %v4571_v11, %s4828_s14  ;;  %v1977_v13 = vpop.f32.mrb[1].mxu0  ;;  %v1976_v43 = vadd.f32 %v1975_v12, %v1910_v51 }
 0x334   : > { %v1979_v14 = vpop.f32.mrb[2].mxu0  ;;  %v1978_v44 = vadd.f32 %v1977_v13, %v1910_v51 }
 0x335   : > { %v1980_v17 = vpop.f32.mrb[3].mxu0  ;;  %v2105_v50 = vmax.f32 %v1976_v43, 0.0  ;;  %v4601_v43 = vld [vmem:[%s6113_s9 + $0xa0] sm:$0xff]  }
 0x336   : > { %v2106_v53 = vmax.f32 %v1978_v44, 0.0  ;;  %v4604_v44 = vld [vmem:[%s6113_s9 + $0xe8] sm:$0xff]  }
 0x337   : > { %2133 = vperm.xlu1 %4576, %v2130_v16  }
 0x33b   : > { %2254 = vperm.xlu1 %4576, %v2251_v18  }
 0x33e   : > { %v2057_v19 = vpop.f32.mrb[4].mxu0 }
 0x33f   : > { %v2058_v22 = vadd.f32 %v2057_v19, %v1910_v51  ;;  %v2059_v23 = vpop.f32.mrb[5].mxu0 }
 0x340   : > { %v2060_v24 = vadd.f32 %v2059_v23, %v1910_v51  ;;  %v2061_v26 = vpop.f32.mrb[6].mxu0  ;;  %v4590_v51 = vld [vmem:[%s6113_s9 + $0x50] sm:$0xff]  }
 0x341   : > { %v2109_v27 = vmax.f32 %v2058_v22, 0.0  ;;  %v2062_v28 = vpop.f32.mrb[7].mxu0 }
 0x342   : > { %v2110_v31 = vmax.f32 %v2060_v24, 0.0 }
 0x343   : > { %v2123_v38 = vpack.c.bf16 %v2109_v27, %v2107_v34  ;;  %v4585_v34 = vld [vmem:[%s6113_s9 + $0x80] sm:$0xff]  }
 0x344   : > { %v2124_v37 = vpack.c.bf16 %v2110_v31, %v2108_v30  ;;  %v4584_v30 = vld [vmem:[%s6113_s9 + $0xc0] sm:$0xff]  }
 0x346   : > { %2193 = vmatprep.subr.bf16.mxu1 %v2124_v37  ;;  %v4589_v37 = vld [vmem:[%s6113_s9 + $0x88] sm:$0xff]  }
 0x347   : > { %2194 = vmatpush1.bf16.msra.mxu1 %v2123_v38  ;;  %v4592_v38 = vld [vmem:[%s6113_s9 + $0xd0] sm:$0xff]  }
 0x348   : > { %3959 = vmatprep.subr.msk.bf16.mxu1 %vm1916_vm2, %v2128_v39  ;;  %v4593_v39 = vld [vmem:[%s6113_s9 + $0x90] sm:$0xff]  }
 0x34b   : > { %2196 = vmatpush1.bf16.msra.mxu1 %v2147_v41  ;;  %v4597_v41 = vld [vmem:[%s6113_s9 + $0x98] sm:$0xff]  }
 0x34c   : > { %4098 = vmatprep.subr.bf16.mxu1 %v4582_v33  ;;  %v4615_v33 = vld [vmem:[%s6113_s9 + $0x100] sm:$0xff]  }
 0x34e   : > { %3960 = vmatmul.mubr.msk.bf16.vlgmr.msra.gmra.mrb[8].mxu1 %vm2136_vm11, %v2129_v42 }
 0x3a5   : > { %v4573_v45 = vpop.permute.xlu1 %4572 }
 0x3a6   : > { %v4575_v46 = vunpack.i.h.bf16 %v4573_v45  ;;  %v4574_v49 = vunpack.i.l.bf16 %v4573_v45  ;;  %v4605_v45 = vld [vmem:[%s6113_s9 + $0xa8] sm:$0xff]  }
 0x3a8   : > { %v2118_v5 = vsel %vm1821_vm5, %v4575_v46, %v4574_v49  ;;  %v2117_v54 = vsel %vm1821_vm5, %v4574_v49, %v4575_v46  ;;  %v4606_v46 = vld [vmem:[%s6113_s9 + $0x70] sm:$0xff]  }
 0x3a9   : > { %v3955_v56 = vpack.c.bf16 %v2105_v50, %v2118_v5  ;;  %v2122_v57 = vpack.c.bf16 %v2106_v53, %v2117_v54  ;;  %v4607_v49 = vld [vmem:[%s6113_s9 + $0x30] sm:$0xff]   ;;  %v4610_v5 = vld [vmem:[%s6113_s9 + $0x78] sm:$0xff]  }
 0x3aa   : > { %v4608_v50 = vld [vmem:[%s6113_s9 + $0xf0] sm:$0xff]   ;;  %v4611_v54 = vld [vmem:[%s6113_s9 + $0x38] sm:$0xff]  }
 0x3ab   : > { %2152 = vmatprep.subr.bf16.mxu0 %v2122_v57  ;;  %v4609_v53 = vld [vmem:[%s6113_s9 + $0xb0] sm:$0xff]   ;;  %v4613_v57 = vld [vmem:[%s6113_s9 + $0xb8] sm:$0xff]  }
 0x3ac   : > { %3956 = vmatpush1.bf16.msk.msra.mxu0 %vm5560_vm10, %v3955_v56  ;;  %v4612_v56 = vld [vmem:[%s6113_s9 + $0xf8] sm:$0xff]  }
 0x3ad   : > { %3957 = vmatprep.subr.msk.bf16.mxu0 %vm1916_vm2, %v2126_v58  ;;  %v4614_v58 = vld [vmem:[%s6113_s9 + $0x140] sm:$0xff]  }
 0x3b0   : > { %2155 = vmatpush1.bf16.msra.mxu0 %v2141_v61 }
 0x3b3   : > { %3958 = vmatmul.mubr.msk.bf16.vlgmr.msra.gmra.mrb[8].mxu0 %vm2136_vm11, %v2129_v42  ;;  %v4600_v42 = vld [vmem:[%s6113_s9 + $0xe0] sm:$0xff]  }
 0x3b4   : > { %2298 = vmatprep.mubr.bf16.mxu0 %v4829_v15  ;;  %v4583_v15 = vld [vmem:[%s6113_s9] sm:$0xff]  }
 0x3b5   : > { %4099 = vmatpush3.bf16.msra.mxu1 %v4583_v15 }
 0x3b6   : > { %v2134_v62 = vpop.permute.xlu1 %2133  ;;  %4100 = vmatprep.subr.bf16.mxu1 %v4586_v36 }
 0x3b9   : > { %4101 = vmatpush3.bf16.msra.mxu1 %v4587_v47 }
 0x3ba   : > { %4102 = vmatprep.subr.bf16.mxu1 %v4590_v51  ;;  %v2255_v61 = vpop.permute.xlu1 %2254 }
 0x3bd   : > { %4103 = vmatpush3.bf16.msra.mxu1 %v4591_v52 }
 0x3be   : > { %4104 = vmatprep.subr.bf16.mxu1 %v4594_v4 }
 0x3c1   : > { %4105 = vmatpush3.bf16.msra.mxu1 %v4595_v6  ;;  %v4617_v6 = vld [vmem:[%s6113_s9 + $0x180] sm:$0xff]  }
 0x3c2   : > { %4106 = vmatprep.subr.bf16.mxu1 %v4598_v48  ;;  %v4618_v48 = vld [vmem:[%s6113_s9 + $0x148] sm:$0xff]  }
 0x3c5   : > { %4107 = vmatpush3.bf16.msra.mxu1 %v4599_v7 }
 0x3c6   : > { %4108 = vmatprep.subr.bf16.mxu1 %v4602_v8  ;;  %v4620_v8 = vld [vmem:[%s6113_s9 + $0x1c8] sm:$0xff]  }
 0x3c9   : > { %4109 = vmatpush3.bf16.msra.mxu1 %v4603_v9  ;;  %v4619_v9 = vld [vmem:[%s6113_s9 + $0x108] sm:$0xff]  }
 0x3ca   : > { %4110 = vmatprep.subr.bf16.mxu1 %v4606_v46  ;;  %v4647_v46 = vld [vmem:[%s6113_s9 + $0x200] sm:$0xff]  }
 0x3cd   : > { %4111 = vmatpush3.bf16.msra.mxu1 %v4607_v49 }
 0x3ce   : > { %4112 = vmatprep.subr.bf16.mxu1 %v4610_v5 }
 0x3d1   : > { %4113 = vmatpush3.bf16.msra.mxu1 %v4611_v54  ;;  %v4649_v54 = vld [vmem:[%s6113_s9 + $0x280] sm:$0xff]  }
 0x3d2   : > { %4142 = vmatprep.subr.bf16.mxu1 %v4614_v58 }
 0x421   : > { %v2227_v63 = vpop.f32.mrb[8].mxu1 }
 0x422   : > { %v2228_v0 = vadd.f32 %v2227_v63, %v2134_v62  ;;  %v2229_v1 = vpop.f32.mrb[9].mxu1 }
 0x423   : > { %v2230_v2 = vadd.f32 %v2229_v1, %v2134_v62  ;;  %v2231_v3 = vpop.f32.mrb[10].mxu1 }
 0x424   : > { %v2236_v32 = vmax.f32 %v2228_v0, 0.0  ;;  %v2232_v55 = vpop.f32.mrb[11].mxu1 }
 0x425   : > { %v2237_v29 = vmax.f32 %v2230_v2, 0.0 }
 0x426   : > { %v2248_v27 = vpack.c.bf16 %v2236_v32, %v2236_v32 }
 0x427   : > { %v4577_v25 = vpack.i.bf16 %v2237_v29, %v2236_v32  ;;  %v2249_v28 = vpack.c.bf16 %v2237_v29, %v2237_v29 }
 0x428   : > { %v2261_v31 = vsel %vm1916_vm2, %v2248_v27, 0  ;;  %v4636_v27 = vld [vmem:[%s6113_s9 + $0x1e8] sm:$0xff]  }
 0x429   : > { %4578 = vrot.lane.b32.xlu0 %v4577_v25, %s4828_s14 }
 0x486   : > { %v2186_v10 = vpop.f32.mrb[8].mxu0 }
 0x487   : > { %v2188_v11 = vpop.f32.mrb[9].mxu0  ;;  %v2187_v14 = vadd.f32 %v2186_v10, %v2134_v62 }
 0x488   : > { %v2190_v12 = vpop.f32.mrb[10].mxu0  ;;  %v2189_v16 = vadd.f32 %v2188_v11, %v2134_v62  ;;  %v4622_v11 = vld [vmem:[%s6113_s9 + $0x150] sm:$0xff]  }
 0x489   : > { %v2191_v13 = vpop.f32.mrb[11].mxu0  ;;  %v2234_v20 = vmax.f32 %v2187_v14, 0.0  ;;  %v4621_v12 = vld [vmem:[%s6113_s9 + $0x188] sm:$0xff]   ;;  %v4623_v14 = vld [vmem:[%s6113_s9 + $0x110] sm:$0xff]  }
 0x48a   : > { %v2235_v21 = vmax.f32 %v2189_v16, 0.0  ;;  %v4624_v13 = vld [vmem:[%s6113_s9 + $0x1d0] sm:$0xff]   ;;  %v4626_v16 = vld [vmem:[%s6113_s9 + $0x158] sm:$0xff]  }
 0x49b   : > { %v4579_v17 = vpop.permute.xlu0 %4578 }
 0x49c   : > { %v4581_v18 = vunpack.i.h.bf16 %v4579_v17  ;;  %v4580_v19 = vunpack.i.l.bf16 %v4579_v17  ;;  %v4625_v17 = vld [vmem:[%s6113_s9 + $0x190] sm:$0xff]  }
 0x49e   : > { %v2243_v22 = vsel %vm1821_vm5, %v4581_v18, %v4580_v19  ;;  %v2242_v23 = vsel %vm1821_vm5, %v4580_v19, %v4581_v18  ;;  %v4628_v18 = vld [vmem:[%s6113_s9 + $0x1d8] sm:$0xff]  }
 0x49f   : > { %v3963_v24 = vpack.c.bf16 %v2234_v20, %v2243_v22  ;;  %v2247_v26 = vpack.c.bf16 %v2235_v21, %v2242_v23  ;;  %v4627_v19 = vld [vmem:[%s6113_s9 + $0x118] sm:$0xff]   ;;  %v4630_v20 = vld [vmem:[%s6113_s9 + $0x160] sm:$0xff]  }
 0x4a0   : > { %v4629_v21 = vld [vmem:[%s6113_s9 + $0x198] sm:$0xff]   ;;  %v4632_v22 = vld [vmem:[%s6113_s9 + $0x1e0] sm:$0xff]  }
 0x4a1   : > { %2266 = vmatprep.subr.bf16.mxu0 %v2247_v26  ;;  %v4631_v23 = vld [vmem:[%s6113_s9 + $0x120] sm:$0xff]  }
 0x4a2   : > { %3964 = vmatpush1.bf16.msk.msra.mxu0 %vm5560_vm10, %v3963_v24  ;;  %v4634_v24 = vld [vmem:[%s6113_s9 + $0x168] sm:$0xff]   ;;  %v4633_v26 = vld [vmem:[%s6113_s9 + $0x1a0] sm:$0xff]  }
 0x4a3   : > { %3965 = vmatprep.subr.msk.bf16.mxu0 %vm1916_vm2, %v2249_v28  ;;  %v4635_v28 = vld [vmem:[%s6113_s9 + $0x128] sm:$0xff]  }
 0x4a6   : > { %2269 = vmatpush1.bf16.msra.mxu0 %v2261_v31  ;;  %v4637_v31 = vld [vmem:[%s6113_s9 + $0x1a8] sm:$0xff]  }
 0x4a7   : > { %4120 = vmatprep.subr.bf16.mxu0 %v4584_v30  ;;  %v4638_v30 = vld [vmem:[%s6113_s9 + $0x170] sm:$0xff]  }
 0x4a9   : > { %3966 = vmatmul.mubr.msk.bf16.vlgmr.msra.gmra.mrb[12].mxu0 %vm2136_vm11, %v2250_v35  ;;  %v4640_v35 = vld [vmem:[%s6113_s9 + $0x1f0] sm:$0xff]  }
 0x4aa   : > { %4121 = vmatpush3.bf16.msra.mxu0 %v4585_v34  ;;  %v4639_v34 = vld [vmem:[%s6113_s9 + $0x130] sm:$0xff]  }
 0x4ab   : > { %4122 = vmatprep.subr.bf16.mxu0 %v4588_v59  ;;  %v4642_v59 = vld [vmem:[%s6113_s9 + $0x178] sm:$0xff]  }
 0x4ae   : > { %4123 = vmatpush3.bf16.msra.mxu0 %v4589_v37  ;;  %v4641_v37 = vld [vmem:[%s6113_s9 + $0x1b0] sm:$0xff]  }
 0x4af   : > { %4124 = vmatprep.subr.bf16.mxu0 %v4592_v38  ;;  %v4644_v38 = vld [vmem:[%s6113_s9 + $0x1f8] sm:$0xff]  }
 0x4b2   : > { %4125 = vmatpush3.bf16.msra.mxu0 %v4593_v39  ;;  %v4643_v39 = vld [vmem:[%s6113_s9 + $0x138] sm:$0xff]  }
 0x4b3   : > { %4126 = vmatprep.subr.bf16.mxu0 %v4596_v40 }
 0x4b6   : > { %4127 = vmatpush3.bf16.msra.mxu0 %v4597_v41  ;;  %v4646_v41 = vld [vmem:[%s6113_s9 + $0x240] sm:$0xff]  }
 0x4b7   : > { %4128 = vmatprep.subr.bf16.mxu0 %v4600_v42  ;;  %v4645_v42 = vld [vmem:[%s6113_s9 + $0x1b8] sm:$0xff]  }
 0x4ba   : > { %4129 = vmatpush3.bf16.msra.mxu0 %v4601_v43 }
 0x4bb   : > { %4130 = vmatprep.subr.bf16.mxu0 %v4604_v44 }
 0x4be   : > { %4131 = vmatpush3.bf16.msra.mxu0 %v4605_v45  ;;  %v4648_v45 = vld [vmem:[%s6113_s9 + $0x2c0] sm:$0xff]  }
 0x4bf   : > { %4132 = vmatprep.subr.bf16.mxu0 %v4608_v50 }
 0x4c2   : > { %4133 = vmatpush3.bf16.msra.mxu0 %v4609_v53  ;;  %v4650_v53 = vld [vmem:[%s6113_s9 + $0x248] sm:$0xff]  }
 0x4c3   : > { %4134 = vmatprep.subr.bf16.mxu0 %v4612_v56 }
 0x4c6   : > { %4135 = vmatpush3.bf16.msra.mxu0 %v4613_v57  ;;  %v4652_v57 = vld [vmem:[%s6113_s9 + $0x2c8] sm:$0xff]  }
 0x4c7   : > { %4164 = vmatprep.subr.bf16.mxu0 %v4616_v60  ;;  %v4651_v60 = vld [vmem:[%s6113_s9 + $0x208] sm:$0xff]  }
 0x57c   : > { %v2300_v62 = vpop.f32.mrb[12].mxu0 }
 0x57d   : > { %v2301_v63 = vadd.f32 %v2300_v62, %v2255_v61  ;;  %v2302_v0 = vpop.f32.mrb[13].mxu0  ;;  %v4653_v62 = vld [vmem:[%s6113_s9 + $0x288] sm:$0xff]  }
 0x57e   : > { %v2303_v1 = vadd.f32 %v2302_v0, %v2255_v61  ;;  %v2304_v2 = vpop.f32.mrb[14].mxu0  ;;  %v4654_v61 = vld [vmem:[%s6113_s9 + $0x250] sm:$0xff]  }
 0x57f   : > { %v5736_v3 = vmax.f32 %v2301_v63, 0.0  ;;  %v2305_v32 = vpop.f32.mrb[15].mxu0  ;;  %v4656_v63 = vld [vmem:[%s6113_s9 + $0x2d0] sm:$0xff]  }
 0x580   : > { %v5738_v55 = vmax.f32 %v2303_v1, 0.0  ;;  %v4655_v0 = vld [vmem:[%s6113_s9 + $0x210] sm:$0xff]   ;;  %v4658_v1 = vld [vmem:[%s6113_s9 + $0x258] sm:$0xff]  }
 0x581   : > { %v2311_v29 = vrot.slane %v5736_v3, 1  ;;  %v2339_v47 = vpack.c.bf16 %v5736_v3, %v5736_v3  ;;  %v2315_v40 = vrot.slane %v5736_v3, 2  ;;  %v2319_v44 = vrot.slane %v5736_v3, 3  ;;  %v4657_v2 = vld [vmem:[%s6113_s9 + $0x290] sm:$0xff]   ;;  %v4660_v32 = vld [vmem:[%s6113_s9 + $0x2d8] sm:$0xff]  }
 0x582   : > { %v2340_v25 = vpack.c.bf16 %v5738_v55, %v5738_v55  ;;  %v2312_v15 = vrot.slane %v5738_v55, 1  ;;  %v2316_v36 = vrot.slane %v5738_v55, 2  ;;  %v2320_v51 = vrot.slane %v5738_v55, 3 }
 0x583   : > { %v2341_v7 = vpack.c.bf16 %v2311_v29, %v2311_v29  ;;  %v2324_v43 = vrot.slane %v5738_v55, 4  ;;  %v2328_v49 = vrot.slane %v5738_v55, 5  ;;  %v2343_v50 = vpack.c.bf16 %v2315_v40, %v2315_v40  ;;  %v4659_v29 = vld [vmem:[%s6113_s9 + $0x218] sm:$0xff]  }
 0x584   : > { %3412 = vmatprep.mubr.bf16.mxu1 %v2340_v25  ;;  %v2342_v52 = vpack.c.bf16 %v2312_v15, %v2312_v15  ;;  %v2344_v4 = vpack.c.bf16 %v2316_v36, %v2316_v36  ;;  %v2346_v10 = vpack.c.bf16 %v2320_v51, %v2320_v51  ;;  %v2345_v56 = vpack.c.bf16 %v2319_v44, %v2319_v44  ;;  %v4662_v25 = vld [vmem:[%s6113_s9 + $0x260] sm:$0xff]   ;;  %v4691_v40 = vld [vmem:[%s6113_s9 + $0x318] sm:$0xff]  }
 0x585   : > { %3413 = vmatmul.mubr.bf16.vlgmr.msra.gmra.mrb[12].mxu1 %v2339_v47  ;;  %v2348_v5 = vpack.c.bf16 %v2324_v43, %v2324_v43  ;;  %v2350_v58 = vpack.c.bf16 %v2328_v49, %v2328_v49  ;;  %v4664_v15 = vld [vmem:[%s6113_s9 + $0x2e0] sm:$0xff]   ;;  %v4666_v47 = vld [vmem:[%s6113_s9 + $0x268] sm:$0xff]  }
 0x586   : > { %4143 = vmatpush3.bf16.msra.mxu1 %v4615_v33  ;;  %3452 = vmatprep.mubr.bf16.mxu0 %v2342_v52  ;;  %v4661_v33 = vld [vmem:[%s6113_s9 + $0x298] sm:$0xff]   ;;  %v4663_v36 = vld [vmem:[%s6113_s9 + $0x220] sm:$0xff]   ;;  %v4668_v52 = vld [vmem:[%s6113_s9 + $0x2e8] sm:$0xff]  }
 0x587   : > { %3492 = vmatprep.mubr.bf16.mxu1 %v2344_v4  ;;  %3453 = vmatmul.mubr.bf16.vlgmr.msra.gmra.mrb[16].mxu0 %v2341_v7  ;;  %v4665_v51 = vld [vmem:[%s6113_s9 + $0x2a0] sm:$0xff]   ;;  %v4667_v4 = vld [vmem:[%s6113_s9 + $0x228] sm:$0xff]   ;;  %v4672_v7 = vld [vmem:[%s6113_s9 + $0x2f0] sm:$0xff]  }
 0x588   : > { %4165 = vmatpush3.bf16.msra.mxu0 %v4617_v6  ;;  %4144 = vmatprep.subr.bf16.mxu1 %v4618_v48  ;;  %v4670_v6 = vld [vmem:[%s6113_s9 + $0x270] sm:$0xff]   ;;  %v4669_v48 = vld [vmem:[%s6113_s9 + $0x2a8] sm:$0xff]   ;;  %v4696_v43 = vld [vmem:[%s6113_s9 + $0x3e0] sm:$0xff]  }
 0x589   : > { %3532 = vmatprep.mubr.bf16.mxu0 %v2346_v10  ;;  %4166 = vmatprep.subr.bf16.mxu0 %v4620_v8  ;;  %v4671_v8 = vld [vmem:[%s6113_s9 + $0x230] sm:$0xff]   ;;  %v4695_v44 = vld [vmem:[%s6113_s9 + $0x320] sm:$0xff]   ;;  %v4700_v49 = vld [vmem:[%s6113_s9 + $0x3e8] sm:$0xff]  }
 0x58a   : > { %4145 = vmatpush3.bf16.msra.mxu1 %v4619_v9  ;;  %v4674_v9 = vld [vmem:[%s6113_s9 + $0x278] sm:$0xff]   ;;  %v4673_v10 = vld [vmem:[%s6113_s9 + $0x2b0] sm:$0xff]  }
 0x58b   : > { %4146 = vmatprep.subr.bf16.mxu1 %v4622_v11  ;;  %v4676_v11 = vld [vmem:[%s6113_s9 + $0x2f8] sm:$0xff]  }
 0x58c   : > { %4167 = vmatpush3.bf16.msra.mxu0 %v4621_v12  ;;  %v4675_v12 = vld [vmem:[%s6113_s9 + $0x238] sm:$0xff]  }
 0x58d   : > { %4168 = vmatprep.subr.bf16.mxu0 %v4624_v13  ;;  %v2323_v13 = vrot.slane %v5736_v3, 4 }
 0x58e   : > { %4147 = vmatpush3.bf16.msra.mxu1 %v4623_v14  ;;  %v4678_v14 = vld [vmem:[%s6113_s9 + $0x340] sm:$0xff]  }
 0x58f   : > { %4148 = vmatprep.subr.bf16.mxu1 %v4626_v16  ;;  %v4677_v16 = vld [vmem:[%s6113_s9 + $0x2b8] sm:$0xff]  }
 0x590   : > { %4169 = vmatpush3.bf16.msra.mxu0 %v4625_v17  ;;  %v2332_v17 = vrot.slane %v5738_v55, 6 }
 0x591   : > { %4170 = vmatprep.subr.bf16.mxu0 %v4628_v18  ;;  %v2327_v18 = vrot.slane %v5736_v3, 5 }
 0x592   : > { %4149 = vmatpush3.bf16.msra.mxu1 %v4627_v19  ;;  %v4680_v19 = vld [vmem:[%s6113_s9 + $0x3c0] sm:$0xff]  }
 0x593   : > { %4150 = vmatprep.subr.bf16.mxu1 %v4630_v20  ;;  %v4679_v20 = vld [vmem:[%s6113_s9 + $0x300] sm:$0xff]  }
 0x594   : > { %4171 = vmatpush3.bf16.msra.mxu0 %v4629_v21  ;;  %v2336_v21 = vrot.slane %v5738_v55, 7 }
 0x595   : > { %4172 = vmatprep.subr.bf16.mxu0 %v4632_v22  ;;  %v2347_v22 = vpack.c.bf16 %v2323_v13, %v2323_v13 }
 0x596   : > { %4151 = vmatpush3.bf16.msra.mxu1 %v4631_v23  ;;  %v4682_v23 = vld [vmem:[%s6113_s9 + $0x348] sm:$0xff]   ;;  %v2354_v55 = vpack.c.bf16 %v2336_v21, %v2336_v21 }
 0x597   : > { %4152 = vmatprep.subr.bf16.mxu1 %v4634_v24  ;;  %v2352_v24 = vpack.c.bf16 %v2332_v17, %v2332_v17 }
 0x598   : > { %4173 = vmatpush3.bf16.msra.mxu0 %v4633_v26  ;;  %v4681_v26 = vld [vmem:[%s6113_s9 + $0x380] sm:$0xff]  }
 0x599   : > { %4174 = vmatprep.subr.bf16.mxu0 %v4636_v27  ;;  %v2349_v27 = vpack.c.bf16 %v2327_v18, %v2327_v18 }
 0x59a   : > { %4153 = vmatpush3.bf16.msra.mxu1 %v4635_v28  ;;  %v4684_v28 = vld [vmem:[%s6113_s9 + $0x3c8] sm:$0xff]  }
 0x59b   : > { %4154 = vmatprep.subr.bf16.mxu1 %v4638_v30  ;;  %v4683_v30 = vld [vmem:[%s6113_s9 + $0x308] sm:$0xff]  }
 0x59c   : > { %4175 = vmatpush3.bf16.msra.mxu0 %v4637_v31  ;;  %v4686_v31 = vld [vmem:[%s6113_s9 + $0x350] sm:$0xff]  }
 0x59d   : > { %4176 = vmatprep.subr.bf16.mxu0 %v4640_v35  ;;  %v4685_v35 = vld [vmem:[%s6113_s9 + $0x388] sm:$0xff]  }
 0x59e   : > { %4155 = vmatpush3.bf16.msra.mxu1 %v4639_v34  ;;  %v4688_v34 = vld [vmem:[%s6113_s9 + $0x3d0] sm:$0xff]  }
 0x59f   : > { %4156 = vmatprep.subr.bf16.mxu1 %v4642_v59  ;;  %v4687_v59 = vld [vmem:[%s6113_s9 + $0x310] sm:$0xff]  }
 0x5a0   : > { %4177 = vmatpush3.bf16.msra.mxu0 %v4641_v37  ;;  %v4690_v37 = vld [vmem:[%s6113_s9 + $0x358] sm:$0xff]  }
 0x5a1   : > { %4178 = vmatprep.subr.bf16.mxu0 %v4644_v38  ;;  %v4689_v38 = vld [vmem:[%s6113_s9 + $0x390] sm:$0xff]  }
 0x5a2   : > { %4157 = vmatpush3.bf16.msra.mxu1 %v4643_v39  ;;  %v4692_v39 = vld [vmem:[%s6113_s9 + $0x3d8] sm:$0xff]  }
 0x5a3   : > { %4186 = vmatprep.subr.bf16.mxu1 %v4646_v41  ;;  %v4694_v41 = vld [vmem:[%s6113_s9 + $0x360] sm:$0xff]  }
 0x5a4   : > { %4179 = vmatpush3.bf16.msra.mxu0 %v4645_v42  ;;  %v4693_v42 = vld [vmem:[%s6113_s9 + $0x398] sm:$0xff]  }
 0x5a5   : > { %3493 = vmatmul.mubr.bf16.vlgmr.msra.gmra.mrb[16].mxu1 %v2343_v50  ;;  %4208 = vmatprep.subr.bf16.mxu0 %v4648_v45  ;;  %v4698_v45 = vld [vmem:[%s6113_s9 + $0x368] sm:$0xff]  }
 0x5a6   : > { %4187 = vmatpush3.bf16.msra.mxu1 %v4647_v46  ;;  %3572 = vmatprep.mubr.bf16.mxu1 %v2348_v5  ;;  %v4697_v46 = vld [vmem:[%s6113_s9 + $0x3a0] sm:$0xff]   ;;  %v4699_v50 = vld [vmem:[%s6113_s9 + $0x328] sm:$0xff]  }
 0x5a7   : > { %3533 = vmatmul.mubr.bf16.vlgmr.msra.gmra.mrb[20].mxu0 %v2345_v56  ;;  %4188 = vmatprep.subr.bf16.mxu1 %v4650_v53  ;;  %v4702_v53 = vld [vmem:[%s6113_s9 + $0x370] sm:$0xff]   ;;  %v4701_v5 = vld [vmem:[%s6113_s9 + $0x3a8] sm:$0xff]  }
 0x5a8   : > { %4209 = vmatpush3.bf16.msra.mxu0 %v4649_v54  ;;  %3612 = vmatprep.mubr.bf16.mxu0 %v2350_v58  ;;  %v4704_v54 = vld [vmem:[%s6113_s9 + $0x3f0] sm:$0xff]  }
 0x5a9   : > { %4210 = vmatprep.subr.bf16.mxu0 %v4652_v57  ;;  %v4703_v56 = vld [vmem:[%s6113_s9 + $0x330] sm:$0xff]   ;;  %v4706_v57 = vld [vmem:[%s6113_s9 + $0x378] sm:$0xff]  }
 0x5aa   : > { %4189 = vmatpush3.bf16.msra.mxu1 %v4651_v60  ;;  %v4705_v58 = vld [vmem:[%s6113_s9 + $0x3b0] sm:$0xff]   ;;  %v4708_v60 = vld [vmem:[%s6113_s9 + $0x3f8] sm:$0xff]  }
 0x5ab   : > { %4190 = vmatprep.subr.bf16.mxu1 %v4654_v61  ;;  %v4707_v61 = vld [vmem:[%s6113_s9 + $0x338] sm:$0xff]  }
 0x5ac   : > { %4211 = vmatpush3.bf16.msra.mxu0 %v4653_v62  ;;  %v2331_v62 = vrot.slane %v5736_v3, 6 }
 0x5ad   : > { %4212 = vmatprep.subr.bf16.mxu0 %v4656_v63  ;;  %v4709_v63 = vld [vmem:[%s6113_s9 + $0x3b8] sm:$0xff]  }
 0x5ae   : > { %4191 = vmatpush3.bf16.msra.mxu1 %v4655_v0  ;;  %v2335_v0 = vrot.slane %v5736_v3, 7 }
 0x5af   : > { %4192 = vmatprep.subr.bf16.mxu1 %v4658_v1  ;;  %v2351_v1 = vpack.c.bf16 %v2331_v62, %v2331_v62 }
 0x5b0   : > { %4213 = vmatpush3.bf16.msra.mxu0 %v4657_v2  ;;  %v2353_v2 = vpack.c.bf16 %v2335_v0, %v2335_v0 }
 0x5b1   : > { %4214 = vmatprep.subr.bf16.mxu0 %v4660_v32 }
 0x5b2   : > { %4193 = vmatpush3.bf16.msra.mxu1 %v4659_v29  ;;  %v2611_v29 = vld [vmem:[%s6139_s17] sm:$0x1] }
 0x5b3   : > { %4194 = vmatprep.subr.bf16.mxu1 %v4662_v25 }
 0x5b4   : > { %4215 = vmatpush3.bf16.msra.mxu0 %v4661_v33 }
 0x5b5   : > { %4216 = vmatprep.subr.bf16.mxu0 %v4664_v15 }
 0x5b6   : > { %4195 = vmatpush3.bf16.msra.mxu1 %v4663_v36 }
 0x5b7   : > { %4196 = vmatprep.subr.bf16.mxu1 %v4666_v47 }
 0x5b8   : > { %4217 = vmatpush3.bf16.msra.mxu0 %v4665_v51 }
 0x5b9   : > { %4218 = vmatprep.subr.bf16.mxu0 %v4668_v52 }
 0x5ba   : > { %4197 = vmatpush3.bf16.msra.mxu1 %v4667_v4 }
 0x5bb   : > { %4198 = vmatprep.subr.bf16.mxu1 %v4670_v6 }
 0x5bc   : > { %4219 = vmatpush3.bf16.msra.mxu0 %v4669_v48 }
 0x5bd   : > { %4220 = vmatprep.subr.bf16.mxu0 %v4672_v7 }
 0x5be   : > { %4199 = vmatpush3.bf16.msra.mxu1 %v4671_v8 }
 0x5bf   : > { %4200 = vmatprep.subr.bf16.mxu1 %v4674_v9 }
 0x5c0   : > { %4221 = vmatpush3.bf16.msra.mxu0 %v4673_v10 }
 0x5c1   : > { %4222 = vmatprep.subr.bf16.mxu0 %v4676_v11 }
 0x5c2   : > { %4201 = vmatpush3.bf16.msra.mxu1 %v4675_v12 }
 0x5c3   : > { %4230 = vmatprep.subr.bf16.mxu1 %v4678_v14 }
 0x5c4   : > { %4223 = vmatpush3.bf16.msra.mxu0 %v4677_v16 }
 0x5c5   : > { %3573 = vmatmul.mubr.bf16.vlgmr.msra.gmra.mrb[20].mxu1 %v2347_v22  ;;  %4252 = vmatprep.subr.bf16.mxu0 %v4680_v19 }
 0x5c6   : > { %4231 = vmatpush3.bf16.msra.mxu1 %v4679_v20  ;;  %3652 = vmatprep.mubr.bf16.mxu1 %v2352_v24 }
 0x5c7   : > { %3613 = vmatmul.mubr.bf16.vlgmr.msra.gmra.mrb[24].mxu0 %v2349_v27  ;;  %4232 = vmatprep.subr.bf16.mxu1 %v4682_v23 }
 0x5c8   : > { %4253 = vmatpush3.bf16.msra.mxu0 %v4681_v26  ;;  %3692 = vmatprep.mubr.bf16.mxu0 %v2354_v55 }
 0x5c9   : > { %4254 = vmatprep.subr.bf16.mxu0 %v4684_v28 }
 0x5ca   : > { %4233 = vmatpush3.bf16.msra.mxu1 %v4683_v30 }
 0x5cb   : > { %4234 = vmatprep.subr.bf16.mxu1 %v4686_v31 }
 0x5cc   : > { %4255 = vmatpush3.bf16.msra.mxu0 %v4685_v35 }
 0x5cd   : > { %4256 = vmatprep.subr.bf16.mxu0 %v4688_v34 }
 0x5ce   : > { %4235 = vmatpush3.bf16.msra.mxu1 %v4687_v59 }
 0x5cf   : > { %4236 = vmatprep.subr.bf16.mxu1 %v4690_v37 }
 0x5d0   : > { %4257 = vmatpush3.bf16.msra.mxu0 %v4689_v38 }
 0x5d1   : > { %4258 = vmatprep.subr.bf16.mxu0 %v4692_v39 }
 0x5d2   : > { %4237 = vmatpush3.bf16.msra.mxu1 %v4691_v40 }
 0x5d3   : > { %4238 = vmatprep.subr.bf16.mxu1 %v4694_v41 }
 0x5d4   : > { %4259 = vmatpush3.bf16.msra.mxu0 %v4693_v42 }
 0x5d5   : > { %4260 = vmatprep.subr.bf16.mxu0 %v4696_v43 }
 0x5d6   : > { %4239 = vmatpush3.bf16.msra.mxu1 %v4695_v44 }
 0x5d7   : > { %4240 = vmatprep.subr.bf16.mxu1 %v4698_v45 }
 0x5d8   : > { %4261 = vmatpush3.bf16.msra.mxu0 %v4697_v46 }
 0x5d9   : > { %4262 = vmatprep.subr.bf16.mxu0 %v4700_v49 }
 0x5da   : > { %4241 = vmatpush3.bf16.msra.mxu1 %v4699_v50 }
 0x5db   : > { %4242 = vmatprep.subr.bf16.mxu1 %v4702_v53 }
 0x5dc   : > { %4263 = vmatpush3.bf16.msra.mxu0 %v4701_v5 }
 0x5dd   : > { %4264 = vmatprep.subr.bf16.mxu0 %v4704_v54 }
 0x5de   : > { %4243 = vmatpush3.bf16.msra.mxu1 %v4703_v56 }
 0x5df   : > { %4244 = vmatprep.subr.bf16.mxu1 %v4706_v57 }
 0x5e0   : > { %4265 = vmatpush3.bf16.msra.mxu0 %v4705_v58 }
 0x5e1   : > { %4266 = vmatprep.subr.bf16.mxu0 %v4708_v60 }
 0x5e2   : > { %4245 = vmatpush3.bf16.msra.mxu1 %v4707_v61 }
 0x5e4   : > { %4267 = vmatpush3.bf16.msra.mxu0 %v4709_v63 }
 0x5e5   : > { %3653 = vmatmul.mubr.bf16.vlgmr.msra.gmra.mrb[24].mxu1 %v2351_v1 }
 0x5e7   : > { %3693 = vmatmul.mubr.bf16.vlgmr.msra.gmra.mrb[28].mxu0 %v2353_v2 }
 0x658   : > { %v4114_v32 = vpop.f32.mrb[12].mxu1 }
 0x659   : > { %v4115_v25 = vpop.f32.mrb[13].mxu1 }
 0x65a   : > { %v4116_v33 = vadd.f32 %v4115_v25, %v4114_v32  ;;  %v4117_v15 = vpop.f32.mrb[14].mxu1  ;;  %v4136_v36 = vpop.f32.mrb[16].mxu0 }
 0x65b   : > { %v4118_v47 = vpop.f32.mrb[15].mxu1  ;;  %v4137_v51 = vpop.f32.mrb[17].mxu0 }
 0x65c   : > { %v3415_v52 = vadd.f32 %v4116_v33, %v2611_v29  ;;  %v4138_v4 = vadd.f32 %v4137_v51, %v4136_v36  ;;  %v4139_v3 = vpop.f32.mrb[18].mxu0 }
 0x65d   : > { %v4140_v6 = vpop.f32.mrb[19].mxu0 }
 0x65e   : > { %v3455_v48 = vadd.f32 %v4138_v4, %v3415_v52 }
 0x678   : > { %v4158_v7 = vpop.f32.mrb[16].mxu1 }
 0x679   : > { %v4159_v8 = vpop.f32.mrb[17].mxu1 }
 0x67a   : > { %v4160_v9 = vadd.f32 %v4159_v8, %v4158_v7  ;;  %v4161_v10 = vpop.f32.mrb[18].mxu1  ;;  %v4180_v11 = vpop.f32.mrb[20].mxu0 }
 0x67b   : > { %v4162_v12 = vpop.f32.mrb[19].mxu1  ;;  %v4181_v13 = vpop.f32.mrb[21].mxu0 }
 0x67c   : > { %v3495_v14 = vadd.f32 %v4160_v9, %v3455_v48  ;;  %v4182_v16 = vadd.f32 %v4181_v13, %v4180_v11  ;;  %v4183_v17 = vpop.f32.mrb[22].mxu0 }
 0x67d   : > { %v4184_v18 = vpop.f32.mrb[23].mxu0 }
 0x67e   : > { %v3535_v19 = vadd.f32 %v4182_v16, %v3495_v14 }
 0x698   : > { %v4202_v20 = vpop.f32.mrb[20].mxu1 }
 0x699   : > { %v4203_v21 = vpop.f32.mrb[21].mxu1 }
 0x69a   : > { %v4204_v22 = vadd.f32 %v4203_v21, %v4202_v20  ;;  %v4205_v23 = vpop.f32.mrb[22].mxu1  ;;  %v4224_v24 = vpop.f32.mrb[24].mxu0 }
 0x69b   : > { %v4206_v26 = vpop.f32.mrb[23].mxu1  ;;  %v4225_v27 = vpop.f32.mrb[25].mxu0 }
 0x69c   : > { %v3575_v28 = vadd.f32 %v4204_v22, %v3535_v19  ;;  %v4226_v55 = vadd.f32 %v4225_v27, %v4224_v24  ;;  %v4227_v30 = vpop.f32.mrb[26].mxu0 }
 0x69d   : > { %v4228_v31 = vpop.f32.mrb[27].mxu0 }
 0x69e   : > { %v3615_v35 = vadd.f32 %v4226_v55, %v3575_v28 }
 0x6b8   : > { %v4246_v34 = vpop.f32.mrb[24].mxu1 }
 0x6b9   : > { %v4247_v59 = vpop.f32.mrb[25].mxu1 }
 0x6ba   : > { %v4248_v37 = vadd.f32 %v4247_v59, %v4246_v34  ;;  %v4249_v38 = vpop.f32.mrb[26].mxu1  ;;  %v4268_v39 = vpop.f32.mrb[28].mxu0 }
 0x6bb   : > { %v4250_v40 = vpop.f32.mrb[27].mxu1  ;;  %v4269_v41 = vpop.f32.mrb[29].mxu0 }
 0x6bc   : > { %v3655_v42 = vadd.f32 %v4248_v37, %v3615_v35  ;;  %v4270_v43 = vadd.f32 %v4269_v41, %v4268_v39  ;;  %v4271_v44 = vpop.f32.mrb[30].mxu0 }
 0x6bd   : > { %v4272_v45 = vpop.f32.mrb[31].mxu0 }
 0x6be   : > { %v3695_v46 = vadd.f32 %v4270_v43, %v3655_v42 }
 0x6c0   : > { %v3700_v49 = vmax.f32 %v3695_v46, 0.0 }
 0x6c2   : > { %3702 = vst.msk [vmem:[%s5471_s15] sm:$0x1] %vm3701_vm12, %v3700_v49 }
 0x6c3 PF: > { %s6140_s30 = sld [smem:[#allocation8_spill]]  ;;  %s6141_s20 = sld [smem:[#allocation16_spill]] }
 0x6c4   : > { %s3716_s14 = sshll.u32 %s5471_s15, 4  ;;  %s3704_s22 = scalar_lea.sflag [#allocation5], %s680_s23  ;;  %s3717_s14 = int_to_ptr.vmem [resolvable:$true] %s3716_s14 }
 0x6c5   : > { %s4714_s17 = scalar_lea.vmem %s3717_s14, 16  ;;  %s4831_s0 = smov [#allocation4]  }
 0x6c6   : > { %p4715_p5 = scmp.ne.s32.totalorder %s3717_s14, %s4714_s17  ;;  %s4718_s1 = sshll.u32 %s4831_s0, 4  ;;  %s4719_s1 = int_to_ptr.vmem [resolvable:$false] %s4718_s1 }
 0x6c7   : > { %s4720_s2 = scalar_lea.vmem %s4719_s1, 32  ;;  %p4721_p9 = scmp.lt.s32.totalorder %s3717_s14, %s4719_s1 }
 0x6c8   : > { %p4716_p6 = pnand %p4715_p5, %p4964_p7  ;;  %p4722_p10 = scmp.lt.s32.totalorder %s4720_s2, %s4714_s17 }
 0x6c9   : > { %s4095_s28 = sshll.u32 %s6140_s30, 4  ;;  %s6142_s13 = smov %s6141_s20 }
 0x6ca   : > { %s6048_s12 = scalar_lea.hbm %s6141_s20, %s4095_s28  ;;  %p4717_p8 = pneg %p4716_p6 }
 0x6cb   : > { %p4723_p11 = por %p4722_p10, %p4721_p9 }
 0x6cd   : > { %p4724_p13 = pnand %p4723_p11, %p4717_p8 }
 0x6cf   : > { %4727 = shalt.err (!%p4724_p13)
}
 0x6d0   : > { %s4728_s23 = scalar_lea.hbm %s6048_s12, 16  ;;  %s4732_s0 = scalar_lea.hbm %s6142_s13, 32 }
 0x6d1   : > { %p4729_p0 = scmp.ne.s32.totalorder %s6048_s12, %s4728_s23  ;;  %p4733_p3 = scmp.lt.u32.totalorder %s6048_s12, %s6142_s13 }
 0x6d2   : > { %p4734_p4 = scmp.lt.u32.totalorder %s4732_s0, %s4728_s23  ;;  %p4736_p6 = scmp.lt.u32.totalorder %s4728_s23, %s6048_s12 }
 0x6d3   : > { %p4730_p1 = pnand %p4729_p0, %p4964_p7 }
 0x6d4   : > { %p4735_p5 = por %p4734_p4, %p4733_p3 }
 0x6d5   : > { %p4731_p2 = pneg %p4730_p1 }
 0x6d6   : > { %p4737_p8 = por %p4736_p6, %p4735_p5 }
 0x6d8   : > { %p4738_p9 = pnand %p4737_p8, %p4731_p2 }
 0x6da   : > { %4741 = shalt.err (!%p4738_p9)
}
 0x6db   : > { %4277 = dma.vmem_to_hbm [thread:$0]  (%p4964_p7), %s3717_s14, 16, %s6048_s12, %s3704_s22  }
 0x6dc PF: > { %s6143_s2 = sld [smem:[#allocation7_spill]]  ;;  %p4283_p10 = scmp.ge.s32.totalorder %s4824_s26, 2 }
 0x6de   : > { %p4280_p11 = pnand %p4283_p10, %p4972_p12 }
 0x6e2   : > { %s3728_s29 = sand.u32 1, %s6143_s2  }
 0x6e3   : > { %s3729_s20 = scalar_lea.sflag [#allocation5], %s3728_s29 }
 0x6e4   : > { %4783 = dma.done.wait (!%p4280_p11), %s3729_s20, 16  }
 0x6e5   : > { %4785 = vsyncadd (!%p4280_p11), %s3729_s20, 4294967280  ;;  %s24_s26 = sadd.s32 1, %s4824_s26   ;;  %s6145_s16 = sld [smem:[#allocation9_spill]] }
 0x6e6   : > { %p21_p13 = scmp.ge.s32.totalorder %s24_s26, 6   ;;  %s6146_s12 = sld [smem:[#allocation10_spill]] }
 0x6e7   : > { %s6147_s17 = smov %s4792_s18  ;;  %s6148_s18 = smov %s4796_s19 }
 0x6e8   : > { %s6149_s19 = smov %s4977_s10  ;;  %s6150_s20 = smov %s4804_s21 }
 0x6e9   : > { %s6151_s21 = smov %s4980_s27  ;;  %s6152_s22 = smov %s4816_s24 }
 0x6ea   : > { %s6153_s23 = smov %s4820_s25  ;;  %23 = sbr.rel (!%p21_p13) target bundleno = 12 (0xc), region = 135 }
 0x6eb   : > { %s6154_s24 = smov %s6145_s16 }
 0x6ec   : > { %s6155_s25 = smov %s6146_s12 }
 0x6f1   :  { %3733 = vsyncpa [#allocation5], 1 }
 0x6f2   :  { %3735 = vsyncpa [#allocation5 + $0x1], 1 }

</bundles_post_ra>
